<compile_context>
chip_gen: v7x
topology: tpu7x:2x2x1
jax: 0.10.0
libtpu: 0.0.40
codegen_flags: <defaults>
</compile_context>

<pallas_src>
import jax
import jax.numpy as jnp
from jax.experimental import pallas as pl
from jax.experimental.pallas import tpu as pltpu

LAYER_DIMS = [28 * 28, 128, 64, 12, 3, 12, 64, 128, 28 * 28]
NUM_LAYERS = len(LAYER_DIMS) - 1  # 8 linear layers
# Activation after each PyTorch layer; the encoder bottleneck Linear(12,3) has
# no activation before the decoder's Linear(3,12) (matches the nn.Sequential).
ORIG_ACTIVATIONS = ("relu", "relu", "relu", None, "relu", "relu", "relu", "sigmoid")
# After fusing the activation-free 12->3->12 pair into a single 12x12 layer:
FUSED_ACTIVATIONS = ("relu", "relu", "relu", "relu", "relu", "relu", "sigmoid")

# MACs per batch row of the fused 7-layer chain (flops = 2 * this).
_FUSED_MACS_PER_ROW = sum(a * b for a, b in
                          [(784, 128), (128, 64), (64, 12), (12, 12),
                           (12, 64), (64, 128), (128, 784)])


def _round_up(x, m):
    return -(-x // m) * m


def _select_tile_m(batch, *, max_tile=1024):
    """Batch-aware tile size.

    Big tiles amortize the ~0.35us per-grid-step fixed cost and get closer to
    the HBM roofline; for large batches we still keep >= 8 grid steps so the
    'parallel' batch axis gives each v7x TensorCore multiple pipelined steps.
    """
    padded = _round_up(batch, 8)
    if padded <= 128:
        return padded                                   # single small tile
    return min(max_tile, _round_up(pl.cdiv(batch, 8), 128))


def _make_kernel(activations, compute_dtype):
    n_layers = len(activations)

    def kernel(*refs):
        # refs = (x_ref, w0, b0, w1, b1, ..., w_{n-1}, b_{n-1}, out_ref)
        x_ref, out_ref = refs[0], refs[-1]
        param_refs = refs[1:-1]

        h = x_ref[...]                       # already compute_dtype (bf16 default)
        for layer in range(n_layers):
            w = param_refs[2 * layer][...]          # (in, out), compute_dtype
            b = param_refs[2 * layer + 1][...]      # (1, out),  float32
            # MXU matmul with native bf16 operands (or f32 in debug mode) and
            # f32 accumulation; bias add / activation stay in f32.
            y = jnp.dot(h, w, preferred_element_type=jnp.float32) + b
            act = activations[layer]
            if act == "relu":
                h = jnp.maximum(y, 0.0).astype(compute_dtype)
            elif act == "sigmoid":
                # sigmoid(x) == 0.5 * tanh(x/2) + 0.5 : tanh goes to the EUP
                # slot, avoiding an exact f32 divide on the widest tensor.
                h = 0.5 * jnp.tanh(0.5 * y) + 0.5
            else:
                h = y.astype(compute_dtype)
        out_ref[...] = h.astype(out_ref.dtype)

    return kernel


def fuse_bottleneck(params):
    """Fold Linear(12,3) -> Linear(3,12) (no activation in between) into one
    12x12 layer: W34 = W3 @ W4, b34 = b3 @ W4 + b4. Mathematically identical.
    Done in f32 before any bf16 cast."""
    p = list(params)
    (w3, b3), (w4, b4) = p[3], p[4]
    w34 = w3 @ w4            # (12, 12)
    b34 = b3 @ w4 + b4       # (1, 12)
    return p[:3] + [(w34, b34)] + p[5:]


def autoencoder_forward(x, params, *, tile_m=None, compute_dtype=jnp.bfloat16,
                        out_dtype=None):
    """x: (B, 784). params: list of 8 (W_t (in,out) f32, b (1,out) f32) tuples.

    compute_dtype=jnp.bfloat16 (default): native MXU operands, f32 accumulation.
    compute_dtype=jnp.float32: slow debug/reference mode.
    """
    B, d_in = x.shape
    if out_dtype is None:
        out_dtype = x.dtype
    if tile_m is None:
        tile_m = _select_tile_m(B)

    fused = fuse_bottleneck(params)
    acts = FUSED_ACTIVATIONS
    d_out = fused[-1][0].shape[1]

    grid_b = pl.cdiv(B, tile_m)
    padded_b = grid_b * tile_m

    # Cast x once in the wrapper: the x tile is DMA'd and MXU-fed as bf16,
    # removing the widest in-kernel cast and ~half the input HBM traffic.
    x_p = x.astype(compute_dtype)
    if padded_b != B:
        x_p = jnp.pad(x_p, ((0, padded_b - B), (0, 0)))

    flat_params = []
    param_shapes = []
    for w, b in fused:
        flat_params += [w.astype(compute_dtype), b.astype(jnp.float32)]
        param_shapes += [w.shape, b.shape]

    in_bytes = jnp.dtype(compute_dtype).itemsize
    out_bytes = jnp.dtype(out_dtype).itemsize
    param_bytes = sum(int(p.size) * p.dtype.itemsize for p in flat_params)
    cost = pl.CostEstimate(
        flops=2 * padded_b * _FUSED_MACS_PER_ROW,
        transcendentals=padded_b * d_out,  # tanh on the output tile
        bytes_accessed=padded_b * (d_in * in_bytes + d_out * out_bytes) + param_bytes,
    )

    kernel = _make_kernel(acts, compute_dtype)

    def call(single_buffer_params):
        in_specs = [pl.BlockSpec((tile_m, d_in), lambda i: (i, 0))]  # x: pipelined
        for shape in param_shapes:
            # Constant index map -> params are fetched once and stay VMEM
            # resident across all grid steps.  Single-buffer them when the
            # installed Pallas supports it (saves a redundant ~0.45 MB).
            if single_buffer_params:
                spec = pl.BlockSpec(shape, lambda i: (0, 0),
                                    pipeline_mode=pl.Buffered(1))
            else:
                spec = pl.BlockSpec(shape, lambda i: (0, 0))
            in_specs.append(spec)

        return pl.pallas_call(
            kernel,
            out_shape=jax.ShapeDtypeStruct((padded_b, d_out), out_dtype),
            grid_spec=pltpu.PrefetchScalarGridSpec(
                num_scalar_prefetch=0,
                grid=(grid_b,),
                in_specs=in_specs,
                out_specs=pl.BlockSpec((tile_m, d_out), lambda i: (i, 0)),
            ),
            compiler_params=pltpu.CompilerParams(
                # Batch tiles are independent -> megacore sharding on v7x.
                dimension_semantics=("parallel",),
                # Headroom for large (up to 1024-row) tiles, esp. v5e's 16 MiB
                # default scoped limit; still well under v7x's 64 MiB physical.
                vmem_limit_bytes=40 * 1024 * 1024,
            ),
            cost_estimate=cost,
        )(x_p, *flat_params)

    try:
        out = call(single_buffer_params=True)
    except Exception:
        # Older JAX / Mosaic versions may reject pl.Buffered(1) for resident
        # params; fall back to default double-buffering (correctness identical).
        out = call(single_buffer_params=False)

    return out[:B] if padded_b != B else out


def init_params(key):
    """Deterministic PyTorch-style init: U(-1/sqrt(fan_in), 1/sqrt(fan_in))."""
    params = []
    for layer in range(NUM_LAYERS):
        fan_in, fan_out = LAYER_DIMS[layer], LAYER_DIMS[layer + 1]
        key, kw, kb = jax.random.split(key, 3)
        bound = 1.0 / (fan_in ** 0.5)
        # Stored already transposed to (in, out) for x @ W.
        w = jax.random.uniform(kw, (fan_in, fan_out), jnp.float32, -bound, bound)
        b = jax.random.uniform(kb, (1, fan_out), jnp.float32, -bound, bound)
        params.append((w, b))
    return params


def reference_forward(x, params):
    """Pure-JAX f32 reference of the original (unfused) 8-layer chain."""
    h = x
    for (w, b), act in zip(params, ORIG_ACTIVATIONS):
        h = h @ w + b
        if act == "relu":
            h = jnp.maximum(h, 0.0)
        elif act == "sigmoid":
            h = jax.nn.sigmoid(h)
    return h


if __name__ == "__main__":
    key = jax.random.PRNGKey(0)
    key, xkey = jax.random.split(key)
    params = init_params(key)

    batch = 16  # small deterministic example; kernel scales to large batches
    x = jax.random.uniform(xkey, (batch, 28 * 28), jnp.float32)

    ref = reference_forward(x, params)

    # Default bf16-MXU path (production configuration).
    out = jax.block_until_ready(autoencoder_forward(x, params))
    assert out.shape == (batch, 28 * 28), out.shape
    assert jnp.allclose(out, ref, atol=5e-2, rtol=5e-2), "bf16 kernel mismatch"

    # f32 debug path with an odd batch (exercises the padding path); tight tol.
    out_f32 = jax.block_until_ready(
        autoencoder_forward(x[:5], params, compute_dtype=jnp.float32))
    assert out_f32.shape == (5, 28 * 28), out_f32.shape
    assert jnp.allclose(out_f32, ref[:5], atol=1e-4, rtol=1e-4), "f32 kernel mismatch"

    print("KERNEL_OK")
</pallas_src>

<mosaic_0001>
module attributes {stable_mosaic.version = 11 : i64} {
  func.func @kernel(%arg0: i32, %arg1: memref<16x784xbf16, #tpu.memory_space<vmem>>, %arg2: memref<784x128xbf16, #tpu.memory_space<vmem>>, %arg3: memref<1x128xf32, #tpu.memory_space<vmem>>, %arg4: memref<128x64xbf16, #tpu.memory_space<vmem>>, %arg5: memref<1x64xf32, #tpu.memory_space<vmem>>, %arg6: memref<64x12xbf16, #tpu.memory_space<vmem>>, %arg7: memref<1x12xf32, #tpu.memory_space<vmem>>, %arg8: memref<12x12xbf16, #tpu.memory_space<vmem>>, %arg9: memref<1x12xf32, #tpu.memory_space<vmem>>, %arg10: memref<12x64xbf16, #tpu.memory_space<vmem>>, %arg11: memref<1x64xf32, #tpu.memory_space<vmem>>, %arg12: memref<64x128xbf16, #tpu.memory_space<vmem>>, %arg13: memref<1x128xf32, #tpu.memory_space<vmem>>, %arg14: memref<128x784xbf16, #tpu.memory_space<vmem>>, %arg15: memref<1x784xf32, #tpu.memory_space<vmem>>, %arg16: memref<16x784xf32, #tpu.memory_space<vmem>>) attributes {dimension_semantics = [#tpu.dimension_semantics<parallel>], iteration_bounds = array<i64: 1>, scalar_prefetch = 0 : i64, scratch_operands = 0 : i64, tpu.core_type = #tpu.core_type<tc>, window_params = [{transform_indices = @transform_0, window_bounds = array<i64: 16, 784>}, {pipeline_mode = #tpu.pipeline_mode<synchronous>, transform_indices = @transform_1, window_bounds = array<i64: 784, 128>}, {pipeline_mode = #tpu.pipeline_mode<synchronous>, transform_indices = @transform_2, window_bounds = array<i64: 1, 128>}, {pipeline_mode = #tpu.pipeline_mode<synchronous>, transform_indices = @transform_3, window_bounds = array<i64: 128, 64>}, {pipeline_mode = #tpu.pipeline_mode<synchronous>, transform_indices = @transform_4, window_bounds = array<i64: 1, 64>}, {pipeline_mode = #tpu.pipeline_mode<synchronous>, transform_indices = @transform_5, window_bounds = array<i64: 64, 12>}, {pipeline_mode = #tpu.pipeline_mode<synchronous>, transform_indices = @transform_6, window_bounds = array<i64: 1, 12>}, {pipeline_mode = #tpu.pipeline_mode<synchronous>, transform_indices = @transform_7, window_bounds = array<i64: 12, 12>}, {pipeline_mode = #tpu.pipeline_mode<synchronous>, transform_indices = @transform_8, window_bounds = array<i64: 1, 12>}, {pipeline_mode = #tpu.pipeline_mode<synchronous>, transform_indices = @transform_9, window_bounds = array<i64: 12, 64>}, {pipeline_mode = #tpu.pipeline_mode<synchronous>, transform_indices = @transform_10, window_bounds = array<i64: 1, 64>}, {pipeline_mode = #tpu.pipeline_mode<synchronous>, transform_indices = @transform_11, window_bounds = array<i64: 64, 128>}, {pipeline_mode = #tpu.pipeline_mode<synchronous>, transform_indices = @transform_12, window_bounds = array<i64: 1, 128>}, {pipeline_mode = #tpu.pipeline_mode<synchronous>, transform_indices = @transform_13, window_bounds = array<i64: 128, 784>}, {pipeline_mode = #tpu.pipeline_mode<synchronous>, transform_indices = @transform_14, window_bounds = array<i64: 1, 784>}, {transform_indices = @transform_15, window_bounds = array<i64: 16, 784>}]} {
    %c0 = arith.constant 0 : index
    %c0_0 = arith.constant 0 : index
    %0 = vector.load %arg1[%c0, %c0_0] : memref<16x784xbf16, #tpu.memory_space<vmem>>, vector<16x784xbf16>
    %c0_1 = arith.constant 0 : index
    %c0_2 = arith.constant 0 : index
    %1 = vector.load %arg2[%c0_1, %c0_2] : memref<784x128xbf16, #tpu.memory_space<vmem>>, vector<784x128xbf16>
    %c0_3 = arith.constant 0 : index
    %c0_4 = arith.constant 0 : index
    %2 = vector.load %arg3[%c0_3, %c0_4] : memref<1x128xf32, #tpu.memory_space<vmem>>, vector<1x128xf32>
    %cst = arith.constant dense<0.000000e+00> : vector<16x128xf32>
    %3 = tpu.matmul %0, %1, %cst {dimension_numbers = #tpu.dot_dimension_numbers<[1], [0], [0], [1], [0, 0, 1, 1], [], []>} : vector<16x784xbf16>, vector<784x128xbf16>, vector<16x128xf32> -> vector<16x128xf32>
    %4 = vector.broadcast %2 : vector<1x128xf32> to vector<16x128xf32>
    %5 = arith.addf %3, %4 : vector<16x128xf32>
    %cst_5 = arith.constant 0.000000e+00 : f32
    %6 = vector.broadcast %cst_5 : f32 to vector<16x128xf32>
    %7 = arith.maximumf %5, %6 : vector<16x128xf32>
    %8 = arith.truncf %7 : vector<16x128xf32> to vector<16x128xbf16>
    %c0_6 = arith.constant 0 : index
    %c0_7 = arith.constant 0 : index
    %9 = vector.load %arg4[%c0_6, %c0_7] : memref<128x64xbf16, #tpu.memory_space<vmem>>, vector<128x64xbf16>
    %c0_8 = arith.constant 0 : index
    %c0_9 = arith.constant 0 : index
    %10 = vector.load %arg5[%c0_8, %c0_9] : memref<1x64xf32, #tpu.memory_space<vmem>>, vector<1x64xf32>
    %cst_10 = arith.constant dense<0.000000e+00> : vector<16x64xf32>
    %11 = tpu.matmul %8, %9, %cst_10 {dimension_numbers = #tpu.dot_dimension_numbers<[1], [0], [0], [1], [0, 0, 1, 1], [], []>} : vector<16x128xbf16>, vector<128x64xbf16>, vector<16x64xf32> -> vector<16x64xf32>
    %12 = vector.broadcast %10 : vector<1x64xf32> to vector<16x64xf32>
    %13 = arith.addf %11, %12 : vector<16x64xf32>
    %cst_11 = arith.constant 0.000000e+00 : f32
    %14 = vector.broadcast %cst_11 : f32 to vector<16x64xf32>
    %15 = arith.maximumf %13, %14 : vector<16x64xf32>
    %16 = arith.truncf %15 : vector<16x64xf32> to vector<16x64xbf16>
    %c0_12 = arith.constant 0 : index
    %c0_13 = arith.constant 0 : index
    %17 = vector.load %arg6[%c0_12, %c0_13] : memref<64x12xbf16, #tpu.memory_space<vmem>>, vector<64x12xbf16>
    %c0_14 = arith.constant 0 : index
    %c0_15 = arith.constant 0 : index
    %18 = vector.load %arg7[%c0_14, %c0_15] : memref<1x12xf32, #tpu.memory_space<vmem>>, vector<1x12xf32>
    %cst_16 = arith.constant dense<0.000000e+00> : vector<16x12xf32>
    %19 = tpu.matmul %16, %17, %cst_16 {dimension_numbers = #tpu.dot_dimension_numbers<[1], [0], [0], [1], [0, 0, 1, 1], [], []>} : vector<16x64xbf16>, vector<64x12xbf16>, vector<16x12xf32> -> vector<16x12xf32>
    %20 = vector.broadcast %18 : vector<1x12xf32> to vector<16x12xf32>
    %21 = arith.addf %19, %20 : vector<16x12xf32>
    %cst_17 = arith.constant 0.000000e+00 : f32
    %22 = vector.broadcast %cst_17 : f32 to vector<16x12xf32>
    %23 = arith.maximumf %21, %22 : vector<16x12xf32>
    %24 = arith.truncf %23 : vector<16x12xf32> to vector<16x12xbf16>
    %c0_18 = arith.constant 0 : index
    %c0_19 = arith.constant 0 : index
    %25 = vector.load %arg8[%c0_18, %c0_19] : memref<12x12xbf16, #tpu.memory_space<vmem>>, vector<12x12xbf16>
    %c0_20 = arith.constant 0 : index
    %c0_21 = arith.constant 0 : index
    %26 = vector.load %arg9[%c0_20, %c0_21] : memref<1x12xf32, #tpu.memory_space<vmem>>, vector<1x12xf32>
    %cst_22 = arith.constant dense<0.000000e+00> : vector<16x12xf32>
    %27 = tpu.matmul %24, %25, %cst_22 {dimension_numbers = #tpu.dot_dimension_numbers<[1], [0], [0], [1], [0, 0, 1, 1], [], []>} : vector<16x12xbf16>, vector<12x12xbf16>, vector<16x12xf32> -> vector<16x12xf32>
    %28 = vector.broadcast %26 : vector<1x12xf32> to vector<16x12xf32>
    %29 = arith.addf %27, %28 : vector<16x12xf32>
    %cst_23 = arith.constant 0.000000e+00 : f32
    %30 = vector.broadcast %cst_23 : f32 to vector<16x12xf32>
    %31 = arith.maximumf %29, %30 : vector<16x12xf32>
    %32 = arith.truncf %31 : vector<16x12xf32> to vector<16x12xbf16>
    %c0_24 = arith.constant 0 : index
    %c0_25 = arith.constant 0 : index
    %33 = vector.load %arg10[%c0_24, %c0_25] : memref<12x64xbf16, #tpu.memory_space<vmem>>, vector<12x64xbf16>
    %c0_26 = arith.constant 0 : index
    %c0_27 = arith.constant 0 : index
    %34 = vector.load %arg11[%c0_26, %c0_27] : memref<1x64xf32, #tpu.memory_space<vmem>>, vector<1x64xf32>
    %cst_28 = arith.constant dense<0.000000e+00> : vector<16x64xf32>
    %35 = tpu.matmul %32, %33, %cst_28 {dimension_numbers = #tpu.dot_dimension_numbers<[1], [0], [0], [1], [0, 0, 1, 1], [], []>} : vector<16x12xbf16>, vector<12x64xbf16>, vector<16x64xf32> -> vector<16x64xf32>
    %36 = vector.broadcast %34 : vector<1x64xf32> to vector<16x64xf32>
    %37 = arith.addf %35, %36 : vector<16x64xf32>
    %cst_29 = arith.constant 0.000000e+00 : f32
    %38 = vector.broadcast %cst_29 : f32 to vector<16x64xf32>
    %39 = arith.maximumf %37, %38 : vector<16x64xf32>
    %40 = arith.truncf %39 : vector<16x64xf32> to vector<16x64xbf16>
    %c0_30 = arith.constant 0 : index
    %c0_31 = arith.constant 0 : index
    %41 = vector.load %arg12[%c0_30, %c0_31] : memref<64x128xbf16, #tpu.memory_space<vmem>>, vector<64x128xbf16>
    %c0_32 = arith.constant 0 : index
    %c0_33 = arith.constant 0 : index
    %42 = vector.load %arg13[%c0_32, %c0_33] : memref<1x128xf32, #tpu.memory_space<vmem>>, vector<1x128xf32>
    %cst_34 = arith.constant dense<0.000000e+00> : vector<16x128xf32>
    %43 = tpu.matmul %40, %41, %cst_34 {dimension_numbers = #tpu.dot_dimension_numbers<[1], [0], [0], [1], [0, 0, 1, 1], [], []>} : vector<16x64xbf16>, vector<64x128xbf16>, vector<16x128xf32> -> vector<16x128xf32>
    %44 = vector.broadcast %42 : vector<1x128xf32> to vector<16x128xf32>
    %45 = arith.addf %43, %44 : vector<16x128xf32>
    %cst_35 = arith.constant 0.000000e+00 : f32
    %46 = vector.broadcast %cst_35 : f32 to vector<16x128xf32>
    %47 = arith.maximumf %45, %46 : vector<16x128xf32>
    %48 = arith.truncf %47 : vector<16x128xf32> to vector<16x128xbf16>
    %c0_36 = arith.constant 0 : index
    %c0_37 = arith.constant 0 : index
    %49 = vector.load %arg14[%c0_36, %c0_37] : memref<128x784xbf16, #tpu.memory_space<vmem>>, vector<128x784xbf16>
    %c0_38 = arith.constant 0 : index
    %c0_39 = arith.constant 0 : index
    %50 = vector.load %arg15[%c0_38, %c0_39] : memref<1x784xf32, #tpu.memory_space<vmem>>, vector<1x784xf32>
    %cst_40 = arith.constant dense<0.000000e+00> : vector<16x784xf32>
    %51 = tpu.matmul %48, %49, %cst_40 {dimension_numbers = #tpu.dot_dimension_numbers<[1], [0], [0], [1], [0, 0, 1, 1], [], []>} : vector<16x128xbf16>, vector<128x784xbf16>, vector<16x784xf32> -> vector<16x784xf32>
    %52 = vector.broadcast %50 : vector<1x784xf32> to vector<16x784xf32>
    %53 = arith.addf %51, %52 : vector<16x784xf32>
    %cst_41 = arith.constant 5.000000e-01 : f32
    %54 = vector.broadcast %cst_41 : f32 to vector<16x784xf32>
    %55 = arith.mulf %54, %53 : vector<16x784xf32>
    %56 = math.tanh %55 : vector<16x784xf32>
    %cst_42 = arith.constant 5.000000e-01 : f32
    %57 = vector.broadcast %cst_42 : f32 to vector<16x784xf32>
    %58 = arith.mulf %57, %56 : vector<16x784xf32>
    %cst_43 = arith.constant 5.000000e-01 : f32
    %59 = vector.broadcast %cst_43 : f32 to vector<16x784xf32>
    %60 = arith.addf %58, %59 : vector<16x784xf32>
    %c0_44 = arith.constant 0 : index
    %c0_45 = arith.constant 0 : index
    %61 = vector.load %arg16[%c0_44, %c0_45] : memref<16x784xf32, #tpu.memory_space<vmem>>, vector<16x784xf32>
    tpu.vector_store %arg16[%c0_44, %c0_45], %60 {strides = array<i32>} : memref<16x784xf32, #tpu.memory_space<vmem>>, vector<16x784xf32>,
    return
  }
  func.func @transform_0(%arg0: i32) -> (i32, i32) {
    %c0_i32 = arith.constant 0 : i32
    %c0_i32_0 = arith.constant 0 : i32
    return %arg0, %c0_i32 : i32, i32
  }
  func.func @transform_1(%arg0: i32) -> (i32, i32) {
    %c0_i32 = arith.constant 0 : i32
    %c0_i32_0 = arith.constant 0 : i32
    %c0_i32_1 = arith.constant 0 : i32
    return %c0_i32, %c0_i32_0 : i32, i32
  }
  func.func @transform_2(%arg0: i32) -> (i32, i32) {
    %c0_i32 = arith.constant 0 : i32
    %c0_i32_0 = arith.constant 0 : i32
    %c0_i32_1 = arith.constant 0 : i32
    return %c0_i32, %c0_i32_0 : i32, i32
  }
  func.func @transform_3(%arg0: i32) -> (i32, i32) {
    %c0_i32 = arith.constant 0 : i32
    %c0_i32_0 = arith.constant 0 : i32
    %c0_i32_1 = arith.constant 0 : i32
    return %c0_i32, %c0_i32_0 : i32, i32
  }
  func.func @transform_4(%arg0: i32) -> (i32, i32) {
    %c0_i32 = arith.constant 0 : i32
    %c0_i32_0 = arith.constant 0 : i32
    %c0_i32_1 = arith.constant 0 : i32
    return %c0_i32, %c0_i32_0 : i32, i32
  }
  func.func @transform_5(%arg0: i32) -> (i32, i32) {
    %c0_i32 = arith.constant 0 : i32
    %c0_i32_0 = arith.constant 0 : i32
    %c0_i32_1 = arith.constant 0 : i32
    return %c0_i32, %c0_i32_0 : i32, i32
  }
  func.func @transform_6(%arg0: i32) -> (i32, i32) {
    %c0_i32 = arith.constant 0 : i32
    %c0_i32_0 = arith.constant 0 : i32
    %c0_i32_1 = arith.constant 0 : i32
    return %c0_i32, %c0_i32_0 : i32, i32
  }
  func.func @transform_7(%arg0: i32) -> (i32, i32) {
    %c0_i32 = arith.constant 0 : i32
    %c0_i32_0 = arith.constant 0 : i32
    %c0_i32_1 = arith.constant 0 : i32
    return %c0_i32, %c0_i32_0 : i32, i32
  }
  func.func @transform_8(%arg0: i32) -> (i32, i32) {
    %c0_i32 = arith.constant 0 : i32
    %c0_i32_0 = arith.constant 0 : i32
    %c0_i32_1 = arith.constant 0 : i32
    return %c0_i32, %c0_i32_0 : i32, i32
  }
  func.func @transform_9(%arg0: i32) -> (i32, i32) {
    %c0_i32 = arith.constant 0 : i32
    %c0_i32_0 = arith.constant 0 : i32
    %c0_i32_1 = arith.constant 0 : i32
    return %c0_i32, %c0_i32_0 : i32, i32
  }
  func.func @transform_10(%arg0: i32) -> (i32, i32) {
    %c0_i32 = arith.constant 0 : i32
    %c0_i32_0 = arith.constant 0 : i32
    %c0_i32_1 = arith.constant 0 : i32
    return %c0_i32, %c0_i32_0 : i32, i32
  }
  func.func @transform_11(%arg0: i32) -> (i32, i32) {
    %c0_i32 = arith.constant 0 : i32
    %c0_i32_0 = arith.constant 0 : i32
    %c0_i32_1 = arith.constant 0 : i32
    return %c0_i32, %c0_i32_0 : i32, i32
  }
  func.func @transform_12(%arg0: i32) -> (i32, i32) {
    %c0_i32 = arith.constant 0 : i32
    %c0_i32_0 = arith.constant 0 : i32
    %c0_i32_1 = arith.constant 0 : i32
    return %c0_i32, %c0_i32_0 : i32, i32
  }
  func.func @transform_13(%arg0: i32) -> (i32, i32) {
    %c0_i32 = arith.constant 0 : i32
    %c0_i32_0 = arith.constant 0 : i32
    %c0_i32_1 = arith.constant 0 : i32
    return %c0_i32, %c0_i32_0 : i32, i32
  }
  func.func @transform_14(%arg0: i32) -> (i32, i32) {
    %c0_i32 = arith.constant 0 : i32
    %c0_i32_0 = arith.constant 0 : i32
    %c0_i32_1 = arith.constant 0 : i32
    return %c0_i32, %c0_i32_0 : i32, i32
  }
  func.func @transform_15(%arg0: i32) -> (i32, i32) {
    %c0_i32 = arith.constant 0 : i32
    %c0_i32_0 = arith.constant 0 : i32
    return %arg0, %c0_i32 : i32, i32
  }
}

module attributes {stable_mosaic.version = 11 : i64} {
  func.func @kernel(%arg0: i32, %arg1: memref<16x784xbf16, #tpu.memory_space<vmem>>, %arg2: memref<784x128xbf16, #tpu.memory_space<vmem>>, %arg3: memref<1x128xf32, #tpu.memory_space<vmem>>, %arg4: memref<128x64xbf16, #tpu.memory_space<vmem>>, %arg5: memref<1x64xf32, #tpu.memory_space<vmem>>, %arg6: memref<64x12xbf16, #tpu.memory_space<vmem>>, %arg7: memref<1x12xf32, #tpu.memory_space<vmem>>, %arg8: memref<12x12xbf16, #tpu.memory_space<vmem>>, %arg9: memref<1x12xf32, #tpu.memory_space<vmem>>, %arg10: memref<12x64xbf16, #tpu.memory_space<vmem>>, %arg11: memref<1x64xf32, #tpu.memory_space<vmem>>, %arg12: memref<64x128xbf16, #tpu.memory_space<vmem>>, %arg13: memref<1x128xf32, #tpu.memory_space<vmem>>, %arg14: memref<128x784xbf16, #tpu.memory_space<vmem>>, %arg15: memref<1x784xf32, #tpu.memory_space<vmem>>, %arg16: memref<16x784xf32, #tpu.memory_space<vmem>>) attributes {dimension_semantics = [#tpu.dimension_semantics<parallel>], iteration_bounds = array<i64: 1>, scalar_prefetch = 0 : i64, scratch_operands = 0 : i64, tpu.core_type = #tpu.core_type<tc>, window_params = [{transform_indices = @transform_0, window_bounds = array<i64: 16, 784>}, {pipeline_mode = #tpu.pipeline_mode<synchronous>, transform_indices = @transform_1, window_bounds = array<i64: 784, 128>}, {pipeline_mode = #tpu.pipeline_mode<synchronous>, transform_indices = @transform_2, window_bounds = array<i64: 1, 128>}, {pipeline_mode = #tpu.pipeline_mode<synchronous>, transform_indices = @transform_3, window_bounds = array<i64: 128, 64>}, {pipeline_mode = #tpu.pipeline_mode<synchronous>, transform_indices = @transform_4, window_bounds = array<i64: 1, 64>}, {pipeline_mode = #tpu.pipeline_mode<synchronous>, transform_indices = @transform_5, window_bounds = array<i64: 64, 12>}, {pipeline_mode = #tpu.pipeline_mode<synchronous>, transform_indices = @transform_6, window_bounds = array<i64: 1, 12>}, {pipeline_mode = #tpu.pipeline_mode<synchronous>, transform_indices = @transform_7, window_bounds = array<i64: 12, 12>}, {pipeline_mode = #tpu.pipeline_mode<synchronous>, transform_indices = @transform_8, window_bounds = array<i64: 1, 12>}, {pipeline_mode = #tpu.pipeline_mode<synchronous>, transform_indices = @transform_9, window_bounds = array<i64: 12, 64>}, {pipeline_mode = #tpu.pipeline_mode<synchronous>, transform_indices = @transform_10, window_bounds = array<i64: 1, 64>}, {pipeline_mode = #tpu.pipeline_mode<synchronous>, transform_indices = @transform_11, window_bounds = array<i64: 64, 128>}, {pipeline_mode = #tpu.pipeline_mode<synchronous>, transform_indices = @transform_12, window_bounds = array<i64: 1, 128>}, {pipeline_mode = #tpu.pipeline_mode<synchronous>, transform_indices = @transform_13, window_bounds = array<i64: 128, 784>}, {pipeline_mode = #tpu.pipeline_mode<synchronous>, transform_indices = @transform_14, window_bounds = array<i64: 1, 784>}, {transform_indices = @transform_15, window_bounds = array<i64: 16, 784>}]} {
    %c0 = arith.constant 0 : index
    %c0_0 = arith.constant 0 : index
    %0 = vector.load %arg1[%c0, %c0_0] : memref<16x784xbf16, #tpu.memory_space<vmem>>, vector<16x784xbf16>
    %c0_1 = arith.constant 0 : index
    %c0_2 = arith.constant 0 : index
    %1 = vector.load %arg2[%c0_1, %c0_2] : memref<784x128xbf16, #tpu.memory_space<vmem>>, vector<784x128xbf16>
    %c0_3 = arith.constant 0 : index
    %c0_4 = arith.constant 0 : index
    %2 = vector.load %arg3[%c0_3, %c0_4] : memref<1x128xf32, #tpu.memory_space<vmem>>, vector<1x128xf32>
    %cst = arith.constant dense<0.000000e+00> : vector<16x128xf32>
    %3 = tpu.matmul %0, %1, %cst {dimension_numbers = #tpu.dot_dimension_numbers<[1], [0], [0], [1], [0, 0, 1, 1], [], []>} : vector<16x784xbf16>, vector<784x128xbf16>, vector<16x128xf32> -> vector<16x128xf32>
    %4 = vector.broadcast %2 : vector<1x128xf32> to vector<16x128xf32>
    %5 = arith.addf %3, %4 : vector<16x128xf32>
    %cst_5 = arith.constant 0.000000e+00 : f32
    %6 = vector.broadcast %cst_5 : f32 to vector<16x128xf32>
    %7 = arith.maximumf %5, %6 : vector<16x128xf32>
    %8 = arith.truncf %7 : vector<16x128xf32> to vector<16x128xbf16>
    %c0_6 = arith.constant 0 : index
    %c0_7 = arith.constant 0 : index
    %9 = vector.load %arg4[%c0_6, %c0_7] : memref<128x64xbf16, #tpu.memory_space<vmem>>, vector<128x64xbf16>
    %c0_8 = arith.constant 0 : index
    %c0_9 = arith.constant 0 : index
    %10 = vector.load %arg5[%c0_8, %c0_9] : memref<1x64xf32, #tpu.memory_space<vmem>>, vector<1x64xf32>
    %cst_10 = arith.constant dense<0.000000e+00> : vector<16x64xf32>
    %11 = tpu.matmul %8, %9, %cst_10 {dimension_numbers = #tpu.dot_dimension_numbers<[1], [0], [0], [1], [0, 0, 1, 1], [], []>} : vector<16x128xbf16>, vector<128x64xbf16>, vector<16x64xf32> -> vector<16x64xf32>
    %12 = vector.broadcast %10 : vector<1x64xf32> to vector<16x64xf32>
    %13 = arith.addf %11, %12 : vector<16x64xf32>
    %cst_11 = arith.constant 0.000000e+00 : f32
    %14 = vector.broadcast %cst_11 : f32 to vector<16x64xf32>
    %15 = arith.maximumf %13, %14 : vector<16x64xf32>
    %16 = arith.truncf %15 : vector<16x64xf32> to vector<16x64xbf16>
    %c0_12 = arith.constant 0 : index
    %c0_13 = arith.constant 0 : index
    %17 = vector.load %arg6[%c0_12, %c0_13] : memref<64x12xbf16, #tpu.memory_space<vmem>>, vector<64x12xbf16>
    %c0_14 = arith.constant 0 : index
    %c0_15 = arith.constant 0 : index
    %18 = vector.load %arg7[%c0_14, %c0_15] : memref<1x12xf32, #tpu.memory_space<vmem>>, vector<1x12xf32>
    %cst_16 = arith.constant dense<0.000000e+00> : vector<16x12xf32>
    %19 = tpu.matmul %16, %17, %cst_16 {dimension_numbers = #tpu.dot_dimension_numbers<[1], [0], [0], [1], [0, 0, 1, 1], [], []>} : vector<16x64xbf16>, vector<64x12xbf16>, vector<16x12xf32> -> vector<16x12xf32>
    %20 = vector.broadcast %18 : vector<1x12xf32> to vector<16x12xf32>
    %21 = arith.addf %19, %20 : vector<16x12xf32>
    %cst_17 = arith.constant 0.000000e+00 : f32
    %22 = vector.broadcast %cst_17 : f32 to vector<16x12xf32>
    %23 = arith.maximumf %21, %22 : vector<16x12xf32>
    %24 = arith.truncf %23 : vector<16x12xf32> to vector<16x12xbf16>
    %c0_18 = arith.constant 0 : index
    %c0_19 = arith.constant 0 : index
    %25 = vector.load %arg8[%c0_18, %c0_19] : memref<12x12xbf16, #tpu.memory_space<vmem>>, vector<12x12xbf16>
    %c0_20 = arith.constant 0 : index
    %c0_21 = arith.constant 0 : index
    %26 = vector.load %arg9[%c0_20, %c0_21] : memref<1x12xf32, #tpu.memory_space<vmem>>, vector<1x12xf32>
    %cst_22 = arith.constant dense<0.000000e+00> : vector<16x12xf32>
    %27 = tpu.matmul %24, %25, %cst_22 {dimension_numbers = #tpu.dot_dimension_numbers<[1], [0], [0], [1], [0, 0, 1, 1], [], []>} : vector<16x12xbf16>, vector<12x12xbf16>, vector<16x12xf32> -> vector<16x12xf32>
    %28 = vector.broadcast %26 : vector<1x12xf32> to vector<16x12xf32>
    %29 = arith.addf %27, %28 : vector<16x12xf32>
    %cst_23 = arith.constant 0.000000e+00 : f32
    %30 = vector.broadcast %cst_23 : f32 to vector<16x12xf32>
    %31 = arith.maximumf %29, %30 : vector<16x12xf32>
    %32 = arith.truncf %31 : vector<16x12xf32> to vector<16x12xbf16>
    %c0_24 = arith.constant 0 : index
    %c0_25 = arith.constant 0 : index
    %33 = vector.load %arg10[%c0_24, %c0_25] : memref<12x64xbf16, #tpu.memory_space<vmem>>, vector<12x64xbf16>
    %c0_26 = arith.constant 0 : index
    %c0_27 = arith.constant 0 : index
    %34 = vector.load %arg11[%c0_26, %c0_27] : memref<1x64xf32, #tpu.memory_space<vmem>>, vector<1x64xf32>
    %cst_28 = arith.constant dense<0.000000e+00> : vector<16x64xf32>
    %35 = tpu.matmul %32, %33, %cst_28 {dimension_numbers = #tpu.dot_dimension_numbers<[1], [0], [0], [1], [0, 0, 1, 1], [], []>} : vector<16x12xbf16>, vector<12x64xbf16>, vector<16x64xf32> -> vector<16x64xf32>
    %36 = vector.broadcast %34 : vector<1x64xf32> to vector<16x64xf32>
    %37 = arith.addf %35, %36 : vector<16x64xf32>
    %cst_29 = arith.constant 0.000000e+00 : f32
    %38 = vector.broadcast %cst_29 : f32 to vector<16x64xf32>
    %39 = arith.maximumf %37, %38 : vector<16x64xf32>
    %40 = arith.truncf %39 : vector<16x64xf32> to vector<16x64xbf16>
    %c0_30 = arith.constant 0 : index
    %c0_31 = arith.constant 0 : index
    %41 = vector.load %arg12[%c0_30, %c0_31] : memref<64x128xbf16, #tpu.memory_space<vmem>>, vector<64x128xbf16>
    %c0_32 = arith.constant 0 : index
    %c0_33 = arith.constant 0 : index
    %42 = vector.load %arg13[%c0_32, %c0_33] : memref<1x128xf32, #tpu.memory_space<vmem>>, vector<1x128xf32>
    %cst_34 = arith.constant dense<0.000000e+00> : vector<16x128xf32>
    %43 = tpu.matmul %40, %41, %cst_34 {dimension_numbers = #tpu.dot_dimension_numbers<[1], [0], [0], [1], [0, 0, 1, 1], [], []>} : vector<16x64xbf16>, vector<64x128xbf16>, vector<16x128xf32> -> vector<16x128xf32>
    %44 = vector.broadcast %42 : vector<1x128xf32> to vector<16x128xf32>
    %45 = arith.addf %43, %44 : vector<16x128xf32>
    %cst_35 = arith.constant 0.000000e+00 : f32
    %46 = vector.broadcast %cst_35 : f32 to vector<16x128xf32>
    %47 = arith.maximumf %45, %46 : vector<16x128xf32>
    %48 = arith.truncf %47 : vector<16x128xf32> to vector<16x128xbf16>
    %c0_36 = arith.constant 0 : index
    %c0_37 = arith.constant 0 : index
    %49 = vector.load %arg14[%c0_36, %c0_37] : memref<128x784xbf16, #tpu.memory_space<vmem>>, vector<128x784xbf16>
    %c0_38 = arith.constant 0 : index
    %c0_39 = arith.constant 0 : index
    %50 = vector.load %arg15[%c0_38, %c0_39] : memref<1x784xf32, #tpu.memory_space<vmem>>, vector<1x784xf32>
    %cst_40 = arith.constant dense<0.000000e+00> : vector<16x784xf32>
    %51 = tpu.matmul %48, %49, %cst_40 {dimension_numbers = #tpu.dot_dimension_numbers<[1], [0], [0], [1], [0, 0, 1, 1], [], []>} : vector<16x128xbf16>, vector<128x784xbf16>, vector<16x784xf32> -> vector<16x784xf32>
    %52 = vector.broadcast %50 : vector<1x784xf32> to vector<16x784xf32>
    %53 = arith.addf %51, %52 : vector<16x784xf32>
    %cst_41 = arith.constant 5.000000e-01 : f32
    %54 = vector.broadcast %cst_41 : f32 to vector<16x784xf32>
    %55 = arith.mulf %54, %53 : vector<16x784xf32>
    %56 = math.tanh %55 : vector<16x784xf32>
    %cst_42 = arith.constant 5.000000e-01 : f32
    %57 = vector.broadcast %cst_42 : f32 to vector<16x784xf32>
    %58 = arith.mulf %57, %56 : vector<16x784xf32>
    %cst_43 = arith.constant 5.000000e-01 : f32
    %59 = vector.broadcast %cst_43 : f32 to vector<16x784xf32>
    %60 = arith.addf %58, %59 : vector<16x784xf32>
    %c0_44 = arith.constant 0 : index
    %c0_45 = arith.constant 0 : index
    %61 = vector.load %arg16[%c0_44, %c0_45] : memref<16x784xf32, #tpu.memory_space<vmem>>, vector<16x784xf32>
    tpu.vector_store %arg16[%c0_44, %c0_45], %60 {strides = array<i32>} : memref<16x784xf32, #tpu.memory_space<vmem>>, vector<16x784xf32>,
    return
  }
  func.func @transform_0(%arg0: i32) -> (i32, i32) {
    %c0_i32 = arith.constant 0 : i32
    %c0_i32_0 = arith.constant 0 : i32
    return %arg0, %c0_i32 : i32, i32
  }
  func.func @transform_1(%arg0: i32) -> (i32, i32) {
    %c0_i32 = arith.constant 0 : i32
    %c0_i32_0 = arith.constant 0 : i32
    %c0_i32_1 = arith.constant 0 : i32
    return %c0_i32, %c0_i32_0 : i32, i32
  }
  func.func @transform_2(%arg0: i32) -> (i32, i32) {
    %c0_i32 = arith.constant 0 : i32
    %c0_i32_0 = arith.constant 0 : i32
    %c0_i32_1 = arith.constant 0 : i32
    return %c0_i32, %c0_i32_0 : i32, i32
  }
  func.func @transform_3(%arg0: i32) -> (i32, i32) {
    %c0_i32 = arith.constant 0 : i32
    %c0_i32_0 = arith.constant 0 : i32
    %c0_i32_1 = arith.constant 0 : i32
    return %c0_i32, %c0_i32_0 : i32, i32
  }
  func.func @transform_4(%arg0: i32) -> (i32, i32) {
    %c0_i32 = arith.constant 0 : i32
    %c0_i32_0 = arith.constant 0 : i32
    %c0_i32_1 = arith.constant 0 : i32
    return %c0_i32, %c0_i32_0 : i32, i32
  }
  func.func @transform_5(%arg0: i32) -> (i32, i32) {
    %c0_i32 = arith.constant 0 : i32
    %c0_i32_0 = arith.constant 0 : i32
    %c0_i32_1 = arith.constant 0 : i32
    return %c0_i32, %c0_i32_0 : i32, i32
  }
  func.func @transform_6(%arg0: i32) -> (i32, i32) {
    %c0_i32 = arith.constant 0 : i32
    %c0_i32_0 = arith.constant 0 : i32
    %c0_i32_1 = arith.constant 0 : i32
    return %c0_i32, %c0_i32_0 : i32, i32
  }
  func.func @transform_7(%arg0: i32) -> (i32, i32) {
    %c0_i32 = arith.constant 0 : i32
    %c0_i32_0 = arith.constant 0 : i32
    %c0_i32_1 = arith.constant 0 : i32
    return %c0_i32, %c0_i32_0 : i32, i32
  }
  func.func @transform_8(%arg0: i32) -> (i32, i32) {
    %c0_i32 = arith.constant 0 : i32
    %c0_i32_0 = arith.constant 0 : i32
    %c0_i32_1 = arith.constant 0 : i32
    return %c0_i32, %c0_i32_0 : i32, i32
  }
  func.func @transform_9(%arg0: i32) -> (i32, i32) {
    %c0_i32 = arith.constant 0 : i32
    %c0_i32_0 = arith.constant 0 : i32
    %c0_i32_1 = arith.constant 0 : i32
    return %c0_i32, %c0_i32_0 : i32, i32
  }
  func.func @transform_10(%arg0: i32) -> (i32, i32) {
    %c0_i32 = arith.constant 0 : i32
    %c0_i32_0 = arith.constant 0 : i32
    %c0_i32_1 = arith.constant 0 : i32
    return %c0_i32, %c0_i32_0 : i32, i32
  }
  func.func @transform_11(%arg0: i32) -> (i32, i32) {
    %c0_i32 = arith.constant 0 : i32
    %c0_i32_0 = arith.constant 0 : i32
    %c0_i32_1 = arith.constant 0 : i32
    return %c0_i32, %c0_i32_0 : i32, i32
  }
  func.func @transform_12(%arg0: i32) -> (i32, i32) {
    %c0_i32 = arith.constant 0 : i32
    %c0_i32_0 = arith.constant 0 : i32
    %c0_i32_1 = arith.constant 0 : i32
    return %c0_i32, %c0_i32_0 : i32, i32
  }
  func.func @transform_13(%arg0: i32) -> (i32, i32) {
    %c0_i32 = arith.constant 0 : i32
    %c0_i32_0 = arith.constant 0 : i32
    %c0_i32_1 = arith.constant 0 : i32
    return %c0_i32, %c0_i32_0 : i32, i32
  }
  func.func @transform_14(%arg0: i32) -> (i32, i32) {
    %c0_i32 = arith.constant 0 : i32
    %c0_i32_0 = arith.constant 0 : i32
    %c0_i32_1 = arith.constant 0 : i32
    return %c0_i32, %c0_i32_0 : i32, i32
  }
  func.func @transform_15(%arg0: i32) -> (i32, i32) {
    %c0_i32 = arith.constant 0 : i32
    %c0_i32_0 = arith.constant 0 : i32
    return %arg0, %c0_i32 : i32, i32
  }
}

</mosaic_0001>

<bundles_post_ra>
// kernel: tpu_custom_call.1
= control target key start
LH: loop header
LB: loop body
LE: loop exit
PB: predicated region body
PF: predicated region fallthrough
CT: control target
= control target key end

     0   :  { %v2266_v38 = vmov 0.0   ;;  %vm2267_vm0 = vmmov 0   ;;  %vm494_vm1 = vcmask 130048   ;;  %s2843_s0 = inlined_call_operand.vmem [shape: bf16[16,784], index: 0, kind: input, shape index: {}]   ;;  %s2844_s1 = inlined_call_operand.vmem [shape: bf16[784,128], index: 1, kind: input, shape index: {}]   ;;  %s2845_s2 = inlined_call_operand.vmem [shape: f32[1,128], index: 2, kind: input, shape index: {}]   ;;  %s2846_s3 = inlined_call_operand.vmem [shape: bf16[128,64], index: 3, kind: input, shape index: {}]   ;;  %s2847_s4 = inlined_call_operand.vmem [shape: f32[1,64], index: 4, kind: input, shape index: {}]   ;;  %s2848_s5 = inlined_call_operand.vmem [shape: bf16[64,12], index: 5, kind: input, shape index: {}]   ;;  %s2849_s6 = inlined_call_operand.vmem [shape: f32[1,12], index: 6, kind: input, shape index: {}]   ;;  %s2850_s7 = inlined_call_operand.vmem [shape: bf16[12,12], index: 7, kind: input, shape index: {}]   ;;  %s2851_s8 = inlined_call_operand.vmem [shape: f32[1,12], index: 8, kind: input, shape index: {}]   ;;  %s2852_s9 = inlined_call_operand.vmem [shape: bf16[12,64], index: 9, kind: input, shape index: {}]   ;;  %s2853_s10 = inlined_call_operand.vmem [shape: f32[1,64], index: 10, kind: input, shape index: {}]   ;;  %s2854_s11 = inlined_call_operand.vmem [shape: bf16[64,128], index: 11, kind: input, shape index: {}]   ;;  %s2855_s12 = inlined_call_operand.vmem [shape: f32[1,128], index: 12, kind: input, shape index: {}]   ;;  %s2856_s13 = inlined_call_operand.vmem [shape: bf16[128,784], index: 13, kind: input, shape index: {}]   ;;  %s2857_s14 = inlined_call_operand.vmem [shape: f32[1,784], index: 14, kind: input, shape index: {}]   ;;  %s2858_s15 = inlined_call_operand.hbm [shape: f32[16,784], index: 15, kind: output, shape index: {}]  }
   0x1   :  { %v2057_v0 = vld [vmem:[%s2844_s1 + $0x40] sm:$0xff]   ;;  %v2061_v4 = vld [vmem:[%s2844_s1 + $0x48] sm:$0xff]   ;;  %v2065_v8 = vld [vmem:[%s2844_s1 + $0x50] sm:$0xff]  }
   0x2   :  { %v2058_v1 = vld [vmem:[%s2844_s1] sm:$0xff]   ;;  %1869 = vmatprep.subr.bf16.mxu0 %v2057_v0  ;;  %v2062_v5 = vld [vmem:[%s2844_s1 + $0x8] sm:$0xff]   ;;  %v2066_v9 = vld [vmem:[%s2844_s1 + $0x10] sm:$0xff]  }
   0x3   :  { %v2059_v2 = vld [vmem:[%s2844_s1 + $0xc0] sm:$0xff]   ;;  %1870 = vmatpush3.bf16.msra.mxu0 %v2058_v1  ;;  %v2063_v6 = vld [vmem:[%s2844_s1 + $0xc8] sm:$0xff]   ;;  %v2067_v10 = vld [vmem:[%s2844_s1 + $0xd0] sm:$0xff]  }
   0x4   :  { %v2060_v3 = vld [vmem:[%s2844_s1 + $0x80] sm:$0xff]   ;;  %1891 = vmatprep.subr.bf16.mxu1 %v2059_v2  ;;  %1871 = vmatprep.subr.bf16.mxu0 %v2061_v4  ;;  %v2064_v7 = vld [vmem:[%s2844_s1 + $0x88] sm:$0xff]   ;;  %v2068_v11 = vld [vmem:[%s2844_s1 + $0x90] sm:$0xff]  }
   0x5   :  { %1892 = vmatpush3.bf16.msra.mxu1 %v2060_v3  ;;  %v2069_v12 = vld [vmem:[%s2844_s1 + $0x58] sm:$0xff]   ;;  %v2073_v16 = vld [vmem:[%s2844_s1 + $0x60] sm:$0xff]   ;;  %v2077_v20 = vld [vmem:[%s2844_s1 + $0x68] sm:$0xff]  }
   0x6   :  { %1893 = vmatprep.subr.bf16.mxu1 %v2063_v6  ;;  %v2070_v13 = vld [vmem:[%s2844_s1 + $0x18] sm:$0xff]   ;;  %v2074_v17 = vld [vmem:[%s2844_s1 + $0x20] sm:$0xff]   ;;  %v2078_v21 = vld [vmem:[%s2844_s1 + $0x28] sm:$0xff]  }
   0x7   :  { %1872 = vmatpush3.bf16.msra.mxu0 %v2062_v5  ;;  %v2071_v14 = vld [vmem:[%s2844_s1 + $0xd8] sm:$0xff]   ;;  %v2075_v18 = vld [vmem:[%s2844_s1 + $0xe0] sm:$0xff]   ;;  %v2079_v22 = vld [vmem:[%s2844_s1 + $0xe8] sm:$0xff]  }
   0x8   :  { %1873 = vmatprep.subr.bf16.mxu0 %v2065_v8  ;;  %v2072_v15 = vld [vmem:[%s2844_s1 + $0x98] sm:$0xff]   ;;  %v2076_v19 = vld [vmem:[%s2844_s1 + $0xa0] sm:$0xff]   ;;  %v2080_v23 = vld [vmem:[%s2844_s1 + $0xa8] sm:$0xff]  }
   0x9   :  { %1894 = vmatpush3.bf16.msra.mxu1 %v2064_v7  ;;  %v2081_v24 = vld [vmem:[%s2844_s1 + $0x70] sm:$0xff]   ;;  %v2085_v28 = vld [vmem:[%s2844_s1 + $0x78] sm:$0xff]   ;;  %v2090_v32 = vld [vmem:[%s2843_s0 + $0x4] ss:$28 sps:$4 sm:$0xff]  }
   0xa   :  { %1895 = vmatprep.subr.bf16.mxu1 %v2067_v10  ;;  %v2082_v25 = vld [vmem:[%s2844_s1 + $0x30] sm:$0xff]   ;;  %v2086_v29 = vld [vmem:[%s2844_s1 + $0x38] sm:$0xff]   ;;  %530 = vmatprep.mubr.bf16.mxu0 %v2090_v32  ;;  %v2092_v34 = vld [vmem:[%s2844_s1 + $0x140] sm:$0xff]  }
   0xb   :  { %1874 = vmatpush3.bf16.msra.mxu0 %v2066_v9  ;;  %v2083_v26 = vld [vmem:[%s2844_s1 + $0xf0] sm:$0xff]   ;;  %v2087_v30 = vld [vmem:[%s2844_s1 + $0xf8] sm:$0xff]   ;;  %v2093_v35 = vld [vmem:[%s2843_s0 + $0x8] ss:$28 sps:$4 sm:$0xff]  }
   0xc   :  { %1875 = vmatprep.subr.bf16.mxu0 %v2069_v12  ;;  %v2084_v27 = vld [vmem:[%s2844_s1 + $0xb0] sm:$0xff]   ;;  %v2088_v31 = vld [vmem:[%s2843_s0] ss:$28 sps:$4 sm:$0xff]   ;;  %v2095_v36 = vld [vmem:[%s2843_s0 + $0xc] ss:$28 sps:$4 sm:$0xff]  }
   0xd   :  { %1896 = vmatpush3.bf16.msra.mxu1 %v2068_v11  ;;  %v2091_v33 = vld [vmem:[%s2844_s1 + $0xb8] sm:$0xff]   ;;  %v2096_v37 = vld [vmem:[%s2844_s1 + $0x100] sm:$0xff]   ;;  %571 = vmatprep.mubr.bf16.mxu1 %v2095_v36  ;;  %v2097_v39 = vld [vmem:[%s2844_s1 + $0x148] sm:$0xff]  }
   0xe   :  { %1897 = vmatprep.subr.bf16.mxu1 %v2071_v14  ;;  %v2098_v40 = vld [vmem:[%s2844_s1 + $0x108] sm:$0xff]   ;;  %v2099_v41 = vld [vmem:[%s2844_s1 + $0x150] sm:$0xff]   ;;  %v2101_v43 = vld [vmem:[%s2844_s1 + $0x158] sm:$0xff]  }
   0xf   :  { %1876 = vmatpush3.bf16.msra.mxu0 %v2070_v13  ;;  %v2100_v42 = vld [vmem:[%s2844_s1 + $0x110] sm:$0xff]   ;;  %v2102_v44 = vld [vmem:[%s2844_s1 + $0x118] sm:$0xff]   ;;  %v2103_v45 = vld [vmem:[%s2844_s1 + $0x160] sm:$0xff]  }
  0x10   :  { %1877 = vmatprep.subr.bf16.mxu0 %v2073_v16  ;;  %v2104_v46 = vld [vmem:[%s2844_s1 + $0x120] sm:$0xff]   ;;  %v2105_v47 = vld [vmem:[%s2844_s1 + $0x168] sm:$0xff]   ;;  %v2114_v50 = vld [vmem:[%s2843_s0 + $0x14] ss:$28 sps:$4 sm:$0xff]  }
  0x11   :  { %1898 = vmatpush3.bf16.msra.mxu1 %v2072_v15  ;;  %v2111_v48 = vld [vmem:[%s2844_s1 + $0x180] sm:$0xff]   ;;  %v2106_v49 = vld [vmem:[%s2844_s1 + $0x128] sm:$0xff]   ;;  %v2107_v51 = vld [vmem:[%s2844_s1 + $0x170] sm:$0xff]  }
  0x12   :  { %1899 = vmatprep.subr.bf16.mxu1 %v2075_v18  ;;  %v2115_v52 = vld [vmem:[%s2843_s0 + $0x18] ss:$28 sps:$4 sm:$0xff]   ;;  %v2112_v56 = vld [vmem:[%s2843_s0 + $0x10] ss:$28 sps:$4 sm:$0xff]  }
  0x13   :  { %1878 = vmatpush3.bf16.msra.mxu0 %v2074_v17  ;;  %v2108_v53 = vld [vmem:[%s2844_s1 + $0x130] sm:$0xff]   ;;  %v2109_v54 = vld [vmem:[%s2844_s1 + $0x178] sm:$0xff]  }
  0x14   :  { %1879 = vmatprep.subr.bf16.mxu0 %v2077_v20  ;;  %v2110_v55 = vld [vmem:[%s2844_s1 + $0x138] sm:$0xff]  }
  0x15   :  { %1900 = vmatpush3.bf16.msra.mxu1 %v2076_v19 }
  0x16   :  { %1901 = vmatprep.subr.bf16.mxu1 %v2079_v22 }
  0x17   :  { %1880 = vmatpush3.bf16.msra.mxu0 %v2078_v21 }
  0x18   :  { %1881 = vmatprep.subr.bf16.mxu0 %v2081_v24 }
  0x19   :  { %1902 = vmatpush3.bf16.msra.mxu1 %v2080_v23 }
  0x1a   :  { %1903 = vmatprep.subr.bf16.mxu1 %v2083_v26 }
  0x1b   :  { %1882 = vmatpush3.bf16.msra.mxu0 %v2082_v25 }
  0x1c   :  { %1883 = vmatprep.subr.bf16.mxu0 %v2085_v28 }
  0x1d   :  { %1904 = vmatpush3.bf16.msra.mxu1 %v2084_v27 }
  0x1e   :  { %1905 = vmatprep.subr.bf16.mxu1 %v2087_v30 }
  0x1f   :  { %1884 = vmatpush3.bf16.msra.mxu0 %v2086_v29 }
  0x20   :  { %1913 = vmatprep.subr.bf16.mxu0 %v2092_v34 }
  0x21   :  { %1906 = vmatpush3.bf16.msra.mxu1 %v2091_v33 }
  0x22   :  { %531 = vmatmul.mubr.bf16.vlgmr.msra.gmra.mrb[0].mxu0 %v2088_v31  ;;  %1969 = vmatprep.subr.bf16.mxu1 %v2266_v38 }
  0x23   :  { %1914 = vmatpush3.bf16.msra.mxu0 %v2096_v37  ;;  %612 = vmatprep.mubr.bf16.mxu0 %v2114_v50 }
  0x24   :  { %572 = vmatmul.mubr.bf16.vlgmr.msra.gmra.mrb[0].mxu1 %v2093_v35  ;;  %1915 = vmatprep.subr.bf16.mxu0 %v2097_v39 }
  0x25   :  { %1971 = vmatprep.mubr.msk.bf16.mxu1 %vm2267_vm0, %v2266_v38  ;;  %1970 = vmatpush3.bf16.msra.mxu1 %v2111_v48 }
  0x26   :  { %1975 = vmatprep.subr.bf16.mxu1 %v2266_v38 }
  0x27   :  { %1916 = vmatpush3.bf16.msra.mxu0 %v2098_v40 }
  0x28   :  { %1917 = vmatprep.subr.bf16.mxu0 %v2099_v41 }
  0x2b   :  { %1918 = vmatpush3.bf16.msra.mxu0 %v2100_v42 }
  0x2c   :  { %1919 = vmatprep.subr.bf16.mxu0 %v2101_v43  ;;  %1972 = vmatmul.mubr.msk.bf16.vlgmr.msra.gmra.mrb[4].mxu1 %vm494_vm1, %v2115_v52 }
  0x2d   :  { %1991 = vmatprep.mubr.msk.bf16.mxu1 %vm2267_vm0, %v2266_v38 }
  0x2f   :  { %1920 = vmatpush3.bf16.msra.mxu0 %v2102_v44 }
  0x30   :  { %1921 = vmatprep.subr.bf16.mxu0 %v2103_v45 }
  0x33   :  { %1922 = vmatpush3.bf16.msra.mxu0 %v2104_v46 }
  0x34   :  { %1923 = vmatprep.subr.bf16.mxu0 %v2105_v47 }
  0x37   :  { %1924 = vmatpush3.bf16.msra.mxu0 %v2106_v49 }
  0x38   :  { %1925 = vmatprep.subr.bf16.mxu0 %v2107_v51 }
  0x3b   :  { %1926 = vmatpush3.bf16.msra.mxu0 %v2108_v53 }
  0x3c   :  { %1927 = vmatprep.subr.bf16.mxu0 %v2109_v54 }
  0x3f   :  { %1928 = vmatpush3.bf16.msra.mxu0 %v2110_v55 }
  0x40   :  { %1995 = vmatprep.subr.bf16.mxu0 %v2266_v38 }
  0x42   :  { %613 = vmatmul.mubr.bf16.vlgmr.msra.gmra.mrb[4].mxu0 %v2112_v56 }
  0x43   :  { %2003 = vmatprep.mubr.msk.bf16.mxu0 %vm2267_vm0, %v2266_v38 }
  0x44   :  { %20 = vsyncpa [#allocation3], 0  ;;  %v2116_v57 = vld [vmem:[%s2846_s3] sm:$0xff]   ;;  %v2117_v58 = vld [vmem:[%s2846_s3 + $0x8] sm:$0xff]   ;;  %vm819_vm2 = vcmask 523264   ;;  %vm885_vm3 = vcmask 1045504  }
  0x45   :  { %1976 = vmatpush3.bf16.msra.mxu1 %v2116_v57  ;;  %v2118_v59 = vld [vmem:[%s2846_s3 + $0x10] sm:$0xff]   ;;  %v2119_v60 = vld [vmem:[%s2846_s3 + $0x18] sm:$0xff]   ;;  %v2120_v61 = vld [vmem:[%s2846_s3 + $0x20] sm:$0xff]   ;;  %vm881_vm4 = vcmask 97280  }
  0x46   :  { %1977 = vmatprep.subr.bf16.mxu1 %v2266_v38  ;;  %v2121_v62 = vld [vmem:[%s2846_s3 + $0x28] sm:$0xff]   ;;  %v2122_v63 = vld [vmem:[%s2846_s3 + $0x30] sm:$0xff]   ;;  %v2123_v0 = vld [vmem:[%s2846_s3 + $0x38] sm:$0xff]  }
  0x47   :  { %v2124_v1 = vld [vmem:[%s2848_s5] sm:$0xff]   ;;  %v2125_v2 = vld [vmem:[%s2848_s5 + $0x8] sm:$0xff]   ;;  %v2126_v37 = vld [vmem:[%s2848_s5 + $0x10] sm:$0xff]  }
  0x48   :  { %1996 = vmatpush3.bf16.msra.mxu0 %v2124_v1  ;;  %v1728_v4 = vld [vmem:[%s2845_s2] ss:$0 sm:$0xff]  ;;  %v2127_v39 = vld [vmem:[%s2848_s5 + $0x18] sm:$0xff]   ;;  %v2131_v1 = vld [vmem:[%s2854_s11 + $0x8] sm:$0xff]  }
  0x49   :  { %1978 = vmatpush3.bf16.msra.mxu1 %v2117_v58  ;;  %1997 = vmatprep.subr.bf16.mxu0 %v2266_v38  ;;  %v1786_v40 = vld [vmem:[%s2847_s4] ss:$0 sm:$0xff] }
  0x4a   :  { %1979 = vmatprep.subr.bf16.mxu1 %v2266_v38  ;;  %v2128_v50 = vld [vmem:[%s2850_s7] sm:$0x3f]  }
  0x4b   :  { %v887_v51 = vsel %vm885_vm3, %v2128_v50, 0  ;;  %v1795_v52 = vld [vmem:[%s2849_s6] ss:$0 sm:$0xff]  ;;  %v2175_v50 = vld [vmem:[%s2856_s13 + $0x15c] ss:$28 sps:$4 sm:$0xff]  }
  0x4c   :  { %1998 = vmatpush3.bf16.msra.mxu0 %v2125_v2  ;;  %v1801_v2 = vld [vmem:[%s2851_s8] ss:$0 sm:$0xff] }
  0x4d   :  { %1980 = vmatpush3.bf16.msra.mxu1 %v2118_v59  ;;  %1999 = vmatprep.subr.bf16.mxu0 %v2266_v38 }
  0x4e   :  { %1981 = vmatprep.subr.bf16.mxu1 %v2266_v38 }
  0x50   :  { %2000 = vmatpush3.bf16.msra.mxu0 %v2126_v37 }
  0x51   :  { %1982 = vmatpush3.bf16.msra.mxu1 %v2119_v60  ;;  %2001 = vmatprep.subr.bf16.mxu0 %v2266_v38 }
  0x52   :  { %1983 = vmatprep.subr.bf16.mxu1 %v2266_v38 }
  0x54   :  { %2002 = vmatpush3.bf16.msra.mxu0 %v2127_v39  ;;  %v2145_v39 = vld [vmem:[%s2856_s13 + $0x44] ss:$28 sps:$4 sm:$0xff]  }
  0x55   :  { %1984 = vmatpush3.bf16.msra.mxu1 %v2120_v61  ;;  %2013 = vmatprep.subr.bf16.mxu0 %v2266_v38 }
  0x56   :  { %1985 = vmatprep.subr.bf16.mxu1 %v2266_v38 }
  0x59   :  { %1986 = vmatpush3.bf16.msra.mxu1 %v2121_v62  ;;  %v2129_v62 = vld [vmem:[%s2852_s9] sm:$0x3f]  }
  0x5a   :  { %1987 = vmatprep.subr.bf16.mxu1 %v2266_v38 }
  0x5d   :  { %1988 = vmatpush3.bf16.msra.mxu1 %v2122_v63  ;;  %v951_v63 = vsel %vm885_vm3, %v2129_v62, 0 }
  0x5e   :  { %1989 = vmatprep.subr.bf16.mxu1 %v2266_v38 }
  0x61   :  { %1990 = vmatpush3.bf16.msra.mxu1 %v2123_v0  ;;  %v2130_v0 = vld [vmem:[%s2854_s11] sm:$0xff]  }
  0x62   :  { %2007 = vmatprep.subr.bf16.mxu1 %v2266_v38 }
  0xf5   :  { %v1885_v3 = vpop.f32.mrb[0].mxu0 }
  0xf6   :  { %v1886_v5 = vpop.f32.mrb[1].mxu0 }
  0xf7   :  { %v1887_v6 = vadd.f32 %v1886_v5, %v1885_v3  ;;  %v1888_v7 = vpop.f32.mrb[2].mxu0  ;;  %v1907_v8 = vpop.f32.mrb[0].mxu1 }
  0xf8   :  { %v1889_v9 = vpop.f32.mrb[3].mxu0  ;;  %v1908_v12 = vpop.f32.mrb[1].mxu1 }
  0xf9   :  { %v533_v10 = vadd.f32 %v1887_v6, %v1728_v4  ;;  %v1890_v11 = vadd.f32 %v1889_v9, %v1888_v7  ;;  %v1909_v13 = vadd.f32 %v1908_v12, %v1907_v8  ;;  %v1910_v14 = vpop.f32.mrb[2].mxu1  ;;  %v2132_v12 = vld [vmem:[%s2854_s11 + $0x10] sm:$0xff]  }
  0xfa   :  { %v1911_v16 = vpop.f32.mrb[3].mxu1 }
  0xfb   :  { %v536_v15 = vadd.f32 %v1890_v11, %v1728_v4  ;;  %v574_v17 = vadd.f32 %v1909_v13, %v533_v10  ;;  %v1912_v18 = vadd.f32 %v1911_v16, %v1910_v14  ;;  %v2133_v13 = vld [vmem:[%s2854_s11 + $0x18] sm:$0xff]   ;;  %v2139_v16 = vld [vmem:[%s2856_s13 + $0xc] ss:$28 sps:$4 sm:$0xff]  }
  0xfc   :  { %v2134_v14 = vld [vmem:[%s2856_s13] ss:$28 sps:$4 sm:$0xff]  }
  0xfd   :  { %v577_v19 = vadd.f32 %v1912_v18, %v536_v15  ;;  %v2136_v15 = vld [vmem:[%s2856_s13 + $0x4] ss:$28 sps:$4 sm:$0xff]   ;;  %v2140_v18 = vld [vmem:[%s2856_s13 + $0x38] ss:$28 sps:$4 sm:$0xff]  }
  0xff   :  { %v655_v20 = vpop.f32.mrb[4].mxu1 }
 0x100   :  { %v1973_v21 = vpop.f32.mrb[5].mxu1 }
 0x101   :  { %v658_v22 = vpop.f32.mrb[6].mxu1  ;;  %v2154_v21 = vld [vmem:[%s2856_s13 + $0xac] ss:$28 sps:$4 sm:$0xff]  }
 0x102   :  { %v1974_v23 = vpop.f32.mrb[7].mxu1 }
 0x103   :  { %v2160_v23 = vld [vmem:[%s2856_s13 + $0xe4] ss:$28 sps:$4 sm:$0xff]  }
 0x115   :  { %v1929_v24 = vpop.f32.mrb[4].mxu0 }
 0x116   :  { %v1930_v25 = vpop.f32.mrb[5].mxu0 }
 0x117   :  { %v1931_v26 = vadd.f32 %v1930_v25, %v1929_v24  ;;  %v1932_v27 = vpop.f32.mrb[6].mxu0  ;;  %v2158_v24 = vld [vmem:[%s2856_s13 + $0xe0] ss:$28 sps:$4 sm:$0xff]  }
 0x118   :  { %v1933_v28 = vpop.f32.mrb[7].mxu0  ;;  %v2166_v25 = vld [vmem:[%s2856_s13 + $0x11c] ss:$28 sps:$4 sm:$0xff]  }
 0x119   :  { %v615_v29 = vadd.f32 %v1931_v26, %v574_v17  ;;  %v1934_v30 = vadd.f32 %v1933_v28, %v1932_v27  ;;  %v2142_v17 = vld [vmem:[%s2856_s13 + $0x3c] ss:$28 sps:$4 sm:$0xff]   ;;  %v1804_v27 = vld [vmem:[%s2853_s10] ss:$0 sm:$0xff] }
 0x11a   :  { %v2164_v26 = vld [vmem:[%s2856_s13 + $0x118] ss:$28 sps:$4 sm:$0xff]  }
 0x11b   :  { %v656_v31 = vadd.f32 %v655_v20, %v615_v29  ;;  %v618_v32 = vadd.f32 %v1934_v30, %v577_v19  ;;  %v2148_v19 = vld [vmem:[%s2856_s13 + $0x74] ss:$28 sps:$4 sm:$0xff]  }
 0x11c   :  { %v2146_v20 = vld [vmem:[%s2856_s13 + $0x70] ss:$28 sps:$4 sm:$0xff]  }
 0x11d   :  { %v659_v33 = vadd.f32 %v658_v22, %v618_v32  ;;  %v662_v34 = vmax.f32 %v656_v31, 0.0  ;;  %v2152_v22 = vld [vmem:[%s2856_s13 + $0xa8] ss:$28 sps:$4 sm:$0xff]  }
 0x11f   :  { %v663_v35 = vmax.f32 %v659_v33, 0.0 }
 0x121   :  { %v664_v36 = vpack.c.bf16 %v663_v35, %v662_v34 }
 0x123   :  { %1992 = vmatmul.mubr.bf16.vlgmr.msra.gmra.mrb[8].mxu1 %v664_v36  ;;  %v2137_v36 = vld [vmem:[%s2856_s13 + $0x8] ss:$28 sps:$4 sm:$0xff]  }
 0x124   :  { %2009 = vmatprep.mubr.msk.bf16.mxu1 %vm2267_vm0, %v2266_v38  ;;  %2008 = vmatpush3.bf16.msra.mxu1 %v887_v51  ;;  %v2170_v51 = vld [vmem:[%s2856_s13 + $0x150] ss:$28 sps:$4 sm:$0xff]  }
 0x125   :  { %2019 = vmatprep.subr.bf16.mxu1 %v2266_v38 }
 0x1f6   :  { %v770_v41 = vpop.f32.mrb[8].mxu1 }
 0x1f7   :  { %v771_v42 = vadd.f32 %v1786_v40, %v770_v41  ;;  %v1993_v43 = vpop.f32.mrb[9].mxu1  ;;  %v2151_v41 = vld [vmem:[%s2856_s13 + $0x7c] ss:$28 sps:$4 sm:$0xff]  }
 0x1f8   :  { %v773_v44 = vpop.f32.mrb[10].mxu1  ;;  %v2157_v43 = vld [vmem:[%s2856_s13 + $0xb4] ss:$28 sps:$4 sm:$0xff]  }
 0x1f9   :  { %v774_v45 = vadd.f32 %v1786_v40, %v773_v44  ;;  %v1994_v46 = vpop.f32.mrb[11].mxu1  ;;  %v777_v47 = vmax.f32 %v771_v42, 0.0  ;;  %v2143_v40 = vld [vmem:[%s2856_s13 + $0x40] ss:$28 sps:$4 sm:$0xff]   ;;  %v2149_v42 = vld [vmem:[%s2856_s13 + $0x78] ss:$28 sps:$4 sm:$0xff]  }
 0x1fa   :  { %v2155_v44 = vld [vmem:[%s2856_s13 + $0xb0] ss:$28 sps:$4 sm:$0xff]   ;;  %v2161_v46 = vld [vmem:[%s2856_s13 + $0xe8] ss:$28 sps:$4 sm:$0xff]  }
 0x1fb   :  { %v778_v48 = vmax.f32 %v774_v45, 0.0  ;;  %v2163_v45 = vld [vmem:[%s2856_s13 + $0xec] ss:$28 sps:$4 sm:$0xff]  }
 0x1fd   :  { %v779_v49 = vpack.c.bf16 %v778_v48, %v777_v47  ;;  %v2169_v47 = vld [vmem:[%s2856_s13 + $0x124] ss:$28 sps:$4 sm:$0xff]  }
 0x1fe   :  { %v2167_v48 = vld [vmem:[%s2856_s13 + $0x120] ss:$28 sps:$4 sm:$0xff]  }
 0x1ff   :  { %2004 = vmatmul.mubr.msk.bf16.vlgmr.msra.gmra.mrb[8].mxu0 %vm819_vm2, %v779_v49  ;;  %v2172_v49 = vld [vmem:[%s2856_s13 + $0x154] ss:$28 sps:$4 sm:$0xff]  }
 0x200   :  { %2015 = vmatprep.mubr.msk.bf16.mxu0 %vm2267_vm0, %v2266_v38  ;;  %2014 = vmatpush3.bf16.msra.mxu0 %v951_v63 }
 0x201   :  { %1472 = vmatprep.subr.bf16.mxu0 %v2136_v15  ;;  %v2197_v15 = vld [vmem:[%s2856_s13 + $0xc0] ss:$28 sps:$4 sm:$0xff]  }
 0x2d2   :  { %v857_v53 = vpop.f32.mrb[8].mxu0 }
 0x2d3   :  { %v858_v54 = vadd.f32 %v1795_v52, %v857_v53  ;;  %v2005_v55 = vpop.f32.mrb[9].mxu0  ;;  %v2178_v53 = vld [vmem:[%s2856_s13 + $0x18c] ss:$28 sps:$4 sm:$0xff]  }
 0x2d4   :  { %v860_v56 = vpop.f32.mrb[10].mxu0  ;;  %v2176_v55 = vld [vmem:[%s2856_s13 + $0x188] ss:$28 sps:$4 sm:$0xff]  }
 0x2d5   :  { %v861_v57 = vadd.f32 %v1795_v52, %v860_v56  ;;  %v2006_v58 = vpop.f32.mrb[11].mxu0  ;;  %v864_v59 = vmax.f32 %v858_v54, 0.0  ;;  %v2173_v52 = vld [vmem:[%s2856_s13 + $0x158] ss:$28 sps:$4 sm:$0xff]   ;;  %v2179_v56 = vld [vmem:[%s2856_s13 + $0x190] ss:$28 sps:$4 sm:$0xff]  }
 0x2d6   :  { %v2181_v54 = vld [vmem:[%s2856_s13 + $0x194] ss:$28 sps:$4 sm:$0xff]   ;;  %v2268_v58 = vmov 0  }
 0x2d7   :  { %v865_v60 = vmax.f32 %v861_v57, 0.0  ;;  %v2184_v57 = vld [vmem:[%s2856_s13 + $0x14] ss:$28 sps:$4 sm:$0xff]  }
 0x2d9   :  { %v866_v61 = vpack.c.bf16 %v865_v60, %v864_v59  ;;  %v1807_v59 = vld [vmem:[%s2855_s12] ss:$0 sm:$0xff] }
 0x2db   :  { %2010 = vmatmul.mubr.msk.bf16.vlgmr.msra.gmra.mrb[12].mxu1 %vm881_vm4, %v866_v61 }
 0x2dc   :  { %2027 = vmatprep.mubr.msk.bf16.mxu1 %vm2267_vm0, %v2266_v38  ;;  %2020 = vmatpush3.bf16.msra.mxu1 %v2130_v0 }
 0x2dd   :  { %2021 = vmatprep.subr.bf16.mxu1 %v2266_v38 }
 0x2e0   :  { %2022 = vmatpush3.bf16.msra.mxu1 %v2131_v1 }
 0x2e1   :  { %2023 = vmatprep.subr.bf16.mxu1 %v2266_v38 }
 0x2e4   :  { %2024 = vmatpush3.bf16.msra.mxu1 %v2132_v12  ;;  %v2193_v12 = vld [vmem:[%s2856_s13 + $0x88] ss:$28 sps:$4 sm:$0xff]  }
 0x2e5   :  { %2025 = vmatprep.subr.bf16.mxu1 %v2266_v38 }
 0x2e8   :  { %2026 = vmatpush3.bf16.msra.mxu1 %v2133_v13  ;;  %v2196_v13 = vld [vmem:[%s2856_s13 + $0xbc] ss:$28 sps:$4 sm:$0xff]  }
 0x2e9   :  { %1515 = vmatprep.subr.bf16.mxu1 %v2139_v16  ;;  %v2200_v16 = vld [vmem:[%s2856_s13 + $0xf4] ss:$28 sps:$4 sm:$0xff]  }
 0x3ae   :  { %v923_v3 = vpop.f32.mrb[12].mxu1 }
 0x3af   :  { %v924_v4 = vadd.f32 %v1801_v2, %v923_v3  ;;  %v2011_v5 = vpop.f32.mrb[13].mxu1 }
 0x3b0   :  { %v926_v6 = vpop.f32.mrb[14].mxu1  ;;  %v2185_v5 = vld [vmem:[%s2856_s13 + $0x18] ss:$28 sps:$4 sm:$0xff]  }
 0x3b1   :  { %v927_v7 = vadd.f32 %v1801_v2, %v926_v6  ;;  %v2012_v8 = vpop.f32.mrb[15].mxu1  ;;  %v930_v9 = vmax.f32 %v924_v4, 0.0  ;;  %v2182_v4 = vld [vmem:[%s2856_s13 + $0x10] ss:$28 sps:$4 sm:$0xff]  }
 0x3b2   :  { %v2186_v8 = vld [vmem:[%s2856_s13 + $0x48] ss:$28 sps:$4 sm:$0xff]  }
 0x3b3   :  { %v931_v10 = vmax.f32 %v927_v7, 0.0  ;;  %v2188_v7 = vld [vmem:[%s2856_s13 + $0x4c] ss:$28 sps:$4 sm:$0xff]  }
 0x3b5   :  { %v932_v11 = vpack.c.bf16 %v931_v10, %v930_v9  ;;  %v2189_v9 = vld [vmem:[%s2856_s13 + $0x50] ss:$28 sps:$4 sm:$0xff]   ;;  %v2192_v10 = vld [vmem:[%s2856_s13 + $0x84] ss:$28 sps:$4 sm:$0xff]  }
 0x3b7   :  { %2016 = vmatmul.mubr.msk.bf16.vlgmr.msra.gmra.mrb[12].mxu0 %vm881_vm4, %v932_v11  ;;  %v2190_v11 = vld [vmem:[%s2856_s13 + $0x80] ss:$28 sps:$4 sm:$0xff]  }
 0x3b8   :  { %1473 = vmatpush1.bf16.msra.mxu0 %v2134_v14  ;;  %1504 = vmatprep.mubr.bf16.mxu0 %v2268_v58  ;;  %v2194_v14 = vld [vmem:[%s2856_s13 + $0xb8] ss:$28 sps:$4 sm:$0xff]  }
 0x3b9   :  { %1474 = vmatprep.subr.bf16.mxu0 %v2142_v17  ;;  %v2198_v17 = vld [vmem:[%s2856_s13 + $0xf0] ss:$28 sps:$4 sm:$0xff]  }
 0x3bc   :  { %1475 = vmatpush1.bf16.msra.mxu0 %v2140_v18  ;;  %v2201_v18 = vld [vmem:[%s2856_s13 + $0xf8] ss:$28 sps:$4 sm:$0xff]  }
 0x3bd   :  { %1476 = vmatprep.subr.bf16.mxu0 %v2148_v19  ;;  %v2204_v19 = vld [vmem:[%s2856_s13 + $0x12c] ss:$28 sps:$4 sm:$0xff]  }
 0x3c0   :  { %1477 = vmatpush1.bf16.msra.mxu0 %v2146_v20  ;;  %v2202_v20 = vld [vmem:[%s2856_s13 + $0x128] ss:$28 sps:$4 sm:$0xff]  }
 0x3c1   :  { %1478 = vmatprep.subr.bf16.mxu0 %v2154_v21  ;;  %v2205_v21 = vld [vmem:[%s2856_s13 + $0x130] ss:$28 sps:$4 sm:$0xff]  }
 0x3c4   :  { %1479 = vmatpush1.bf16.msra.mxu0 %v2152_v22  ;;  %v2208_v22 = vld [vmem:[%s2856_s13 + $0x164] ss:$28 sps:$4 sm:$0xff]  }
 0x3c5   :  { %1480 = vmatprep.subr.bf16.mxu0 %v2160_v23  ;;  %v2206_v23 = vld [vmem:[%s2856_s13 + $0x160] ss:$28 sps:$4 sm:$0xff]  }
 0x3c8   :  { %1481 = vmatpush1.bf16.msra.mxu0 %v2158_v24  ;;  %v2209_v24 = vld [vmem:[%s2856_s13 + $0x168] ss:$28 sps:$4 sm:$0xff]  }
 0x3c9   :  { %1482 = vmatprep.subr.bf16.mxu0 %v2166_v25  ;;  %v2212_v25 = vld [vmem:[%s2856_s13 + $0x19c] ss:$28 sps:$4 sm:$0xff]  }
 0x3cc   :  { %1483 = vmatpush1.bf16.msra.mxu0 %v2164_v26  ;;  %v2210_v26 = vld [vmem:[%s2856_s13 + $0x198] ss:$28 sps:$4 sm:$0xff]  }
 0x3cd   :  { %1484 = vmatprep.subr.bf16.mxu0 %v2172_v49 }
 0x3d0   :  { %1485 = vmatpush1.bf16.msra.mxu0 %v2170_v51 }
 0x3d1   :  { %1486 = vmatprep.subr.bf16.mxu0 %v2178_v53 }
 0x3d4   :  { %1487 = vmatpush1.bf16.msra.mxu0 %v2176_v55 }
 0x3d5   :  { %1558 = vmatprep.subr.bf16.mxu0 %v2184_v57 }
 0x48a   :  { %v987_v28 = vpop.f32.mrb[12].mxu0 }
 0x48b   :  { %v988_v29 = vadd.f32 %v1804_v27, %v987_v28  ;;  %v2017_v30 = vpop.f32.mrb[13].mxu0  ;;  %v1149_v28 = vlaneseq }
 0x48c   :  { %v990_v31 = vpop.f32.mrb[14].mxu0 }
 0x48d   :  { %v991_v32 = vadd.f32 %v1804_v27, %v990_v31  ;;  %v2018_v33 = vpop.f32.mrb[15].mxu0  ;;  %v994_v34 = vmax.f32 %v988_v29, 0.0  ;;  %v2213_v27 = vld [vmem:[%s2856_s13 + $0x1a0] ss:$28 sps:$4 sm:$0xff]   ;;  %v2808_v29 = vshrl.u32 %v1149_v28, 7  ;;  %s2269_s13 = smov [#allocation2]  }
 0x48f   :  { %v995_v35 = vmax.f32 %v991_v32, 0.0  ;;  %v1151_v30 = vsub.s32 0, %v2808_v29  ;;  %v1159_v31 = vsub.s32 2, %v2808_v29  ;;  %v2815_v32 = vld [vmem:[%s2857_s14] sm:$0x7f]  ;;  %v1155_v33 = vsub.s32 1, %v2808_v29 }
 0x490   :  { %s1717_s14 = sshll.u32 %s2269_s13, 4  ;;  %s1718_s14 = int_to_ptr.vmem [resolvable:$true] %s1717_s14 }
 0x491   :  { %v996_v37 = vpack.c.bf16 %v995_v35, %v994_v34  ;;  %v1152_v34 = vrot.slane %v2815_v32, %v1151_v30  ;;  %v1160_v35 = vrot.slane %v2815_v32, %v1159_v31  ;;  %s2242_s11 = scalar_lea.vmem %s1718_s14, 1792  ;;  %p2247_p1 = scmp.lt.s32.totalorder %s1718_s14, %s1718_s14 }
 0x492   :  { %p2243_p0 = scmp.ne.s32.totalorder %s1718_s14, %s2242_s11  ;;  %p2248_p2 = scmp.lt.s32.totalorder %s2242_s11, %s2242_s11 }
 0x493   :  { %2028 = vmatmul.mubr.msk.bf16.vlgmr.msra.gmra.mrb[16].mxu1 %vm819_vm2, %v996_v37 }
 0x494   :  { %1516 = vmatpush1.bf16.msra.mxu1 %v2137_v36  ;;  %1547 = vmatprep.mubr.bf16.mxu1 %v2268_v58  ;;  %v1156_v36 = vrot.slane %v2815_v32, %v1155_v33  ;;  %p2249_p3 = por %p2248_p2, %p2247_p1 }
 0x495   :  { %1517 = vmatprep.subr.bf16.mxu1 %v2145_v39 }
 0x496   :  { %p2250_p4 = pnand %p2249_p3, %p2243_p0 }
 0x498   :  { %1518 = vmatpush1.bf16.msra.mxu1 %v2143_v40 }
 0x499   :  { %1519 = vmatprep.subr.bf16.mxu1 %v2151_v41 }
 0x49c   :  { %1520 = vmatpush1.bf16.msra.mxu1 %v2149_v42 }
 0x49d   :  { %1521 = vmatprep.subr.bf16.mxu1 %v2157_v43 }
 0x4a0   :  { %1522 = vmatpush1.bf16.msra.mxu1 %v2155_v44 }
 0x4a1   :  { %1523 = vmatprep.subr.bf16.mxu1 %v2163_v45 }
 0x4a4   :  { %1524 = vmatpush1.bf16.msra.mxu1 %v2161_v46 }
 0x4a5   :  { %1525 = vmatprep.subr.bf16.mxu1 %v2169_v47 }
 0x4a8   :  { %1526 = vmatpush1.bf16.msra.mxu1 %v2167_v48 }
 0x4a9   :  { %1527 = vmatprep.subr.bf16.mxu1 %v2175_v50 }
 0x4ac   :  { %1528 = vmatpush1.bf16.msra.mxu1 %v2173_v52 }
 0x4ad   :  { %1529 = vmatprep.subr.bf16.mxu1 %v2181_v54 }
 0x4b0   :  { %1530 = vmatpush1.bf16.msra.mxu1 %v2179_v56 }
 0x4b1   :  { %2031 = vmatprep.subr.bf16.mxu1 %v2266_v38 }
 0x566   :  { %v1073_v60 = vpop.f32.mrb[16].mxu1 }
 0x567   :  { %v1074_v61 = vadd.f32 %v1807_v59, %v1073_v60  ;;  %v2029_v62 = vpop.f32.mrb[17].mxu1 }
 0x568   :  { %v1076_v63 = vpop.f32.mrb[18].mxu1 }
 0x569   :  { %v1077_v0 = vadd.f32 %v1807_v59, %v1076_v63  ;;  %v2030_v1 = vpop.f32.mrb[19].mxu1  ;;  %v1080_v2 = vmax.f32 %v1074_v61, 0.0 }
 0x56b   :  { %v1081_v3 = vmax.f32 %v1077_v0, 0.0 }
 0x56d   :  { %v1082_v6 = vpack.c.bf16 %v1081_v3, %v1080_v2 }
 0x56f   :  { %1505 = vmatmul.mubr.bf16.vlgmr.msra.gmra.mrb[16].mxu0 %v1082_v6  ;;  %1548 = vmatmul.mubr.bf16.vlgmr.msra.gmra.mrb[20].mxu1 %v1082_v6 }
 0x570   :  { %1559 = vmatpush1.bf16.msra.mxu0 %v2182_v4  ;;  %2032 = vmatpush3.bf16.msra.mxu1 %v2185_v5 }
 0x571   :  { %1560 = vmatprep.subr.bf16.mxu0 %v2188_v7  ;;  %2033 = vmatprep.subr.bf16.mxu1 %v2266_v38 }
 0x572   :  { %1590 = vmatprep.mubr.bf16.mxu0 %v2268_v58  ;;  %2047 = vmatprep.mubr.msk.bf16.mxu1 %vm2267_vm0, %v2266_v38 }
 0x574   :  { %1561 = vmatpush1.bf16.msra.mxu0 %v2186_v8  ;;  %2034 = vmatpush3.bf16.msra.mxu1 %v2189_v9 }
 0x575   :  { %1562 = vmatprep.subr.bf16.mxu0 %v2192_v10  ;;  %2035 = vmatprep.subr.bf16.mxu1 %v2266_v38 }
 0x578   :  { %1563 = vmatpush1.bf16.msra.mxu0 %v2190_v11  ;;  %2036 = vmatpush3.bf16.msra.mxu1 %v2193_v12 }
 0x579   :  { %1564 = vmatprep.subr.bf16.mxu0 %v2196_v13  ;;  %2037 = vmatprep.subr.bf16.mxu1 %v2266_v38 }
 0x57c   :  { %1565 = vmatpush1.bf16.msra.mxu0 %v2194_v14  ;;  %2038 = vmatpush3.bf16.msra.mxu1 %v2197_v15 }
 0x57d   :  { %1566 = vmatprep.subr.bf16.mxu0 %v2200_v16  ;;  %2039 = vmatprep.subr.bf16.mxu1 %v2266_v38 }
 0x580   :  { %1567 = vmatpush1.bf16.msra.mxu0 %v2198_v17  ;;  %2040 = vmatpush3.bf16.msra.mxu1 %v2201_v18 }
 0x581   :  { %1568 = vmatprep.subr.bf16.mxu0 %v2204_v19  ;;  %2041 = vmatprep.subr.bf16.mxu1 %v2266_v38 }
 0x584   :  { %1569 = vmatpush1.bf16.msra.mxu0 %v2202_v20  ;;  %2042 = vmatpush3.bf16.msra.mxu1 %v2205_v21 }
 0x585   :  { %1570 = vmatprep.subr.bf16.mxu0 %v2208_v22  ;;  %2043 = vmatprep.subr.bf16.mxu1 %v2266_v38 }
 0x588   :  { %1571 = vmatpush1.bf16.msra.mxu0 %v2206_v23  ;;  %2044 = vmatpush3.bf16.msra.mxu1 %v2209_v24  ;;  %v1167_v23 = vsub.s32 4, %v2808_v29  ;;  %v1175_v24 = vsub.s32 6, %v2808_v29 }
 0x589   :  { %1572 = vmatprep.subr.bf16.mxu0 %v2212_v25  ;;  %2045 = vmatprep.subr.bf16.mxu1 %v2266_v38  ;;  %v1163_v38 = vsub.s32 3, %v2808_v29  ;;  %v1171_v25 = vsub.s32 5, %v2808_v29 }
 0x58b   :  { %v1164_v37 = vrot.slane %v2815_v32, %v1163_v38  ;;  %v1172_v28 = vrot.slane %v2815_v32, %v1171_v25 }
 0x58c   :  { %1573 = vmatpush1.bf16.msra.mxu0 %v2210_v26  ;;  %2046 = vmatpush3.bf16.msra.mxu1 %v2213_v27  ;;  %v1168_v26 = vrot.slane %v2815_v32, %v1167_v23  ;;  %v1176_v27 = vrot.slane %v2815_v32, %v1175_v24 }
 0x58f   :  { %1591 = vmatmul.mubr.bf16.vlgmr.msra.gmra.mrb[20].mxu0 %v1082_v6  ;;  %2048 = vmatmul.mubr.bf16.vlgmr.msra.gmra.mrb[24].mxu1 %v1082_v6 }
 0x642   :  { %v1506_v39 = vpop.f32.mrb[16].mxu0  ;;  %v1549_v40 = vpop.f32.mrb[20].mxu1 }
 0x643   :  { %v1507_v41 = vadd.f32 %v1506_v39, %v1152_v34  ;;  %v1550_v42 = vadd.f32 %v1549_v40, %v1160_v35  ;;  %v1508_v43 = vpop.f32.mrb[17].mxu0  ;;  %v1551_v44 = vpop.f32.mrb[21].mxu1 }
 0x644   :  { %v1509_v45 = vadd.f32 %v1508_v43, %v1156_v36  ;;  %v1552_v46 = vadd.f32 %v1551_v44, %v1164_v37  ;;  %v1510_v47 = vpop.f32.mrb[18].mxu0  ;;  %v1553_v48 = vpop.f32.mrb[22].mxu1 }
 0x645   :  { %v1642_v49 = vmul.f32 0.5, %v1507_v41  ;;  %v1644_v50 = vmul.f32 0.5, %v1550_v42  ;;  %v1511_v51 = vadd.f32 %v1510_v47, %v1152_v34  ;;  %v1554_v52 = vadd.f32 %v1553_v48, %v1160_v35  ;;  %v1512_v53 = vpop.f32.mrb[19].mxu0  ;;  %v1555_v54 = vpop.f32.mrb[23].mxu1 }
 0x646   :  { %v1643_v55 = vmul.f32 0.5, %v1509_v45  ;;  %v1645_v56 = vmul.f32 0.5, %v1552_v46  ;;  %v1513_v57 = vadd.f32 %v1512_v53, %v1156_v36  ;;  %v1556_v58 = vadd.f32 %v1555_v54, %v1164_v37 }
 0x647   :  { %2214 = vtanh.f32 %v1642_v49  ;;  %v1649_v59 = vmul.f32 0.5, %v1511_v51  ;;  %v1651_v60 = vmul.f32 0.5, %v1554_v52 }
 0x648   :  { %2216 = vtanh.f32 %v1644_v50  ;;  %v1650_v61 = vmul.f32 0.5, %v1513_v57  ;;  %v1652_v62 = vmul.f32 0.5, %v1556_v58 }
 0x649   :  { %2218 = vtanh.f32 %v1643_v55 }
 0x64a   :  { %2220 = vtanh.f32 %v1645_v56 }
 0x64b   :  { %2222 = vtanh.f32 %v1649_v59 }
 0x64c   :  { %2224 = vtanh.f32 %v1651_v60 }
 0x64d   :  { %2226 = vtanh.f32 %v1650_v61 }
 0x64e   :  { %2228 = vtanh.f32 %v1652_v62 }
 0x651   :  { %v2215_v63 = vpop.eup %2214 }
 0x652   :  { %v2217_v0 = vpop.eup %2216  ;;  %v1670_v1 = vmul.f32 0.5, %v2215_v63 }
 0x653   :  { %v2219_v2 = vpop.eup %2218  ;;  %v1672_v3 = vmul.f32 0.5, %v2217_v0 }
 0x654   :  { %v2221_v4 = vpop.eup %2220  ;;  %v1684_v5 = vadd.f32 0.5, %v1670_v1  ;;  %v1671_v6 = vmul.f32 0.5, %v2219_v2 }
 0x655   :  { %v2223_v7 = vpop.eup %2222  ;;  %v1686_v8 = vadd.f32 0.5, %v1672_v3  ;;  %v1673_v9 = vmul.f32 0.5, %v2221_v4 }
 0x656   :  { %v2225_v10 = vpop.eup %2224  ;;  %1698 = vst [vmem:[#allocation2] sm:$0xff] %v1684_v5  ;;  %v1685_v11 = vadd.f32 0.5, %v1671_v6  ;;  %v1677_v12 = vmul.f32 0.5, %v2223_v7 }
 0x657   :  { %v2227_v13 = vpop.eup %2226  ;;  %1700 = vst [vmem:[#allocation2 + $0x10] sm:$0xff] %v1686_v8  ;;  %v1687_v14 = vadd.f32 0.5, %v1673_v9  ;;  %v1679_v15 = vmul.f32 0.5, %v2225_v10 }
 0x658   :  { %v2229_v16 = vpop.eup %2228  ;;  %1699 = vst [vmem:[#allocation2 + $0x8] sm:$0xff] %v1685_v11  ;;  %v1691_v17 = vadd.f32 0.5, %v1677_v12  ;;  %v1678_v18 = vmul.f32 0.5, %v2227_v13 }
 0x659   :  { %1701 = vst [vmem:[#allocation2 + $0x18] sm:$0xff] %v1687_v14  ;;  %v1693_v19 = vadd.f32 0.5, %v1679_v15  ;;  %v1680_v20 = vmul.f32 0.5, %v2229_v16 }
 0x65a   :  { %1705 = vst [vmem:[#allocation2 + $0x38] sm:$0xff] %v1691_v17  ;;  %v1692_v21 = vadd.f32 0.5, %v1678_v18 }
 0x65b   :  { %1707 = vst [vmem:[#allocation2 + $0x48] sm:$0xff] %v1693_v19  ;;  %v1694_v22 = vadd.f32 0.5, %v1680_v20 }
 0x65c   :  { %1706 = vst [vmem:[#allocation2 + $0x40] sm:$0xff] %v1692_v21 }
 0x65d   :  { %1708 = vst [vmem:[#allocation2 + $0x50] sm:$0xff] %v1694_v22 }
 0x662   :  { %v1592_v30 = vpop.f32.mrb[20].mxu0  ;;  %v1635_v31 = vpop.f32.mrb[24].mxu1 }
 0x663   :  { %v1593_v33 = vadd.f32 %v1592_v30, %v1168_v26  ;;  %v1636_v38 = vadd.f32 %v1635_v31, %v1176_v27  ;;  %v1594_v34 = vpop.f32.mrb[21].mxu0  ;;  %v2049_v35 = vpop.f32.mrb[25].mxu1 }
 0x664   :  { %v1595_v36 = vadd.f32 %v1594_v34, %v1172_v28  ;;  %v1596_v37 = vpop.f32.mrb[22].mxu0  ;;  %v1638_v39 = vpop.f32.mrb[26].mxu1 }
 0x665   :  { %v1646_v40 = vmul.f32 0.5, %v1593_v33  ;;  %v1648_v41 = vmul.f32 0.5, %v1636_v38  ;;  %v1597_v42 = vadd.f32 %v1596_v37, %v1168_v26  ;;  %v1639_v29 = vadd.f32 %v1638_v39, %v1176_v27  ;;  %v1598_v43 = vpop.f32.mrb[23].mxu0  ;;  %v2050_v44 = vpop.f32.mrb[27].mxu1 }
 0x666   :  { %v1647_v45 = vmul.f32 0.5, %v1595_v36  ;;  %v1599_v46 = vadd.f32 %v1598_v43, %v1172_v28 }
 0x667   :  { %2230 = vtanh.f32 %v1646_v40  ;;  %v1653_v47 = vmul.f32 0.5, %v1597_v42  ;;  %v1655_v32 = vmul.f32 0.5, %v1639_v29 }
 0x668   :  { %2232 = vtanh.f32 %v1648_v41  ;;  %v1654_v48 = vmul.f32 0.5, %v1599_v46 }
 0x669   :  { %2234 = vtanh.f32 %v1647_v45 }
 0x66a   :  { %2236 = vtanh.f32 %v1653_v47 }
 0x66b   :  { %2238 = vtanh.f32 %v1655_v32 }
 0x66c   :  { %2240 = vtanh.f32 %v1654_v48 }
 0x671   :  { %v2231_v49 = vpop.eup %2230 }
 0x672   :  { %v2233_v50 = vpop.eup %2232  ;;  %v1674_v51 = vmul.f32 0.5, %v2231_v49 }
 0x673   :  { %v2235_v52 = vpop.eup %2234  ;;  %v1676_v53 = vmul.f32 0.5, %v2233_v50 }
 0x674   :  { %v2237_v54 = vpop.eup %2236  ;;  %v1688_v55 = vadd.f32 0.5, %v1674_v51  ;;  %v1675_v56 = vmul.f32 0.5, %v2235_v52 }
 0x675   :  { %v2239_v57 = vpop.eup %2238  ;;  %v1690_v58 = vadd.f32 0.5, %v1676_v53  ;;  %v1681_v59 = vmul.f32 0.5, %v2237_v54 }
 0x676   :  { %v2241_v60 = vpop.eup %2240  ;;  %1702 = vst [vmem:[#allocation2 + $0x20] sm:$0xff] %v1688_v55  ;;  %v1689_v61 = vadd.f32 0.5, %v1675_v56  ;;  %v1683_v62 = vmul.f32 0.5, %v2239_v57 }
 0x677   :  { %1704 = vst.msk [vmem:[#allocation2 + $0x30] sm:$0xff] %vm494_vm1, %v1690_v58  ;;  %v1695_v63 = vadd.f32 0.5, %v1681_v59  ;;  %v1682_v0 = vmul.f32 0.5, %v2241_v60 }
 0x678   :  { %1703 = vst [vmem:[#allocation2 + $0x28] sm:$0xff] %v1689_v61  ;;  %v1697_v1 = vadd.f32 0.5, %v1683_v62 }
 0x679   :  { %1709 = vst [vmem:[#allocation2 + $0x58] sm:$0xff] %v1695_v63  ;;  %v1696_v2 = vadd.f32 0.5, %v1682_v0 }
 0x67a   :  { %1711 = vst.msk [vmem:[#allocation2 + $0x68] sm:$0xff] %vm494_vm1, %v1697_v1 }
 0x67b   :  { %1710 = vst [vmem:[#allocation2 + $0x60] sm:$0xff] %v1696_v2 }
 0x67c   :  { %2253 = shalt.err (!%p2250_p4)
}
 0x67d   :  { %s2254_s17 = scalar_lea.hbm %s2858_s15, 1792 }
 0x67e   :  { %p2255_p5 = scmp.ne.s32.totalorder %s2858_s15, %s2254_s17  ;;  %p2258_p6 = scmp.lt.u32.totalorder %s2254_s17, %s2858_s15 }
 0x680   :  { %p2260_p7 = pnand %p2258_p6, %p2255_p5 }
 0x682   :  { %2263 = shalt.err (!%p2260_p7)
}
 0x683   :  { %s2270_s6 = smov 896   ;;  %s2271_s20 = smov 56  }
 0x684   :  { %1723 = dma.vmem_to_hbm [thread:$0]  %s1718_s14, 1792, %s2858_s15, [#allocation3], %s2270_s6, %s2270_s6, %s2271_s20  }
 0x685   :  { %2264 = dma.done.wait [#allocation3], 1792  }
 0x686   :  { %2265 = vsyncadd [#allocation3], 4294965504 }
 0x687   :  { %1727 = vsyncpa [#allocation3], 1 }

// kernel: tpu_custom_call.1
= control target key start
LH: loop header
LB: loop body
LE: loop exit
PB: predicated region body
PF: predicated region fallthrough
CT: control target
= control target key end

     0   :  { %v2266_v38 = vmov 0.0   ;;  %vm2267_vm0 = vmmov 0   ;;  %vm494_vm1 = vcmask 130048   ;;  %s2843_s0 = inlined_call_operand.vmem [shape: bf16[16,784], index: 0, kind: input, shape index: {}]   ;;  %s2844_s1 = inlined_call_operand.vmem [shape: bf16[784,128], index: 1, kind: input, shape index: {}]   ;;  %s2845_s2 = inlined_call_operand.vmem [shape: f32[1,128], index: 2, kind: input, shape index: {}]   ;;  %s2846_s3 = inlined_call_operand.vmem [shape: bf16[128,64], index: 3, kind: input, shape index: {}]   ;;  %s2847_s4 = inlined_call_operand.vmem [shape: f32[1,64], index: 4, kind: input, shape index: {}]   ;;  %s2848_s5 = inlined_call_operand.vmem [shape: bf16[64,12], index: 5, kind: input, shape index: {}]   ;;  %s2849_s6 = inlined_call_operand.vmem [shape: f32[1,12], index: 6, kind: input, shape index: {}]   ;;  %s2850_s7 = inlined_call_operand.vmem [shape: bf16[12,12], index: 7, kind: input, shape index: {}]   ;;  %s2851_s8 = inlined_call_operand.vmem [shape: f32[1,12], index: 8, kind: input, shape index: {}]   ;;  %s2852_s9 = inlined_call_operand.vmem [shape: bf16[12,64], index: 9, kind: input, shape index: {}]   ;;  %s2853_s10 = inlined_call_operand.vmem [shape: f32[1,64], index: 10, kind: input, shape index: {}]   ;;  %s2854_s11 = inlined_call_operand.vmem [shape: bf16[64,128], index: 11, kind: input, shape index: {}]   ;;  %s2855_s12 = inlined_call_operand.vmem [shape: f32[1,128], index: 12, kind: input, shape index: {}]   ;;  %s2856_s13 = inlined_call_operand.vmem [shape: bf16[128,784], index: 13, kind: input, shape index: {}]   ;;  %s2857_s14 = inlined_call_operand.vmem [shape: f32[1,784], index: 14, kind: input, shape index: {}]   ;;  %s2858_s15 = inlined_call_operand.hbm [shape: f32[16,784], index: 15, kind: output, shape index: {}]  }
   0x1   :  { %v2057_v0 = vld [vmem:[%s2844_s1 + $0x40] sm:$0xff]   ;;  %v2061_v4 = vld [vmem:[%s2844_s1 + $0x48] sm:$0xff]   ;;  %v2065_v8 = vld [vmem:[%s2844_s1 + $0x50] sm:$0xff]  }
   0x2   :  { %v2058_v1 = vld [vmem:[%s2844_s1] sm:$0xff]   ;;  %1869 = vmatprep.subr.bf16.mxu0 %v2057_v0  ;;  %v2062_v5 = vld [vmem:[%s2844_s1 + $0x8] sm:$0xff]   ;;  %v2066_v9 = vld [vmem:[%s2844_s1 + $0x10] sm:$0xff]  }
   0x3   :  { %v2059_v2 = vld [vmem:[%s2844_s1 + $0xc0] sm:$0xff]   ;;  %1870 = vmatpush3.bf16.msra.mxu0 %v2058_v1  ;;  %v2063_v6 = vld [vmem:[%s2844_s1 + $0xc8] sm:$0xff]   ;;  %v2067_v10 = vld [vmem:[%s2844_s1 + $0xd0] sm:$0xff]  }
   0x4   :  { %v2060_v3 = vld [vmem:[%s2844_s1 + $0x80] sm:$0xff]   ;;  %1891 = vmatprep.subr.bf16.mxu1 %v2059_v2  ;;  %1871 = vmatprep.subr.bf16.mxu0 %v2061_v4  ;;  %v2064_v7 = vld [vmem:[%s2844_s1 + $0x88] sm:$0xff]   ;;  %v2068_v11 = vld [vmem:[%s2844_s1 + $0x90] sm:$0xff]  }
   0x5   :  { %1892 = vmatpush3.bf16.msra.mxu1 %v2060_v3  ;;  %v2069_v12 = vld [vmem:[%s2844_s1 + $0x58] sm:$0xff]   ;;  %v2073_v16 = vld [vmem:[%s2844_s1 + $0x60] sm:$0xff]   ;;  %v2077_v20 = vld [vmem:[%s2844_s1 + $0x68] sm:$0xff]  }
   0x6   :  { %1893 = vmatprep.subr.bf16.mxu1 %v2063_v6  ;;  %v2070_v13 = vld [vmem:[%s2844_s1 + $0x18] sm:$0xff]   ;;  %v2074_v17 = vld [vmem:[%s2844_s1 + $0x20] sm:$0xff]   ;;  %v2078_v21 = vld [vmem:[%s2844_s1 + $0x28] sm:$0xff]  }
   0x7   :  { %1872 = vmatpush3.bf16.msra.mxu0 %v2062_v5  ;;  %v2071_v14 = vld [vmem:[%s2844_s1 + $0xd8] sm:$0xff]   ;;  %v2075_v18 = vld [vmem:[%s2844_s1 + $0xe0] sm:$0xff]   ;;  %v2079_v22 = vld [vmem:[%s2844_s1 + $0xe8] sm:$0xff]  }
   0x8   :  { %1873 = vmatprep.subr.bf16.mxu0 %v2065_v8  ;;  %v2072_v15 = vld [vmem:[%s2844_s1 + $0x98] sm:$0xff]   ;;  %v2076_v19 = vld [vmem:[%s2844_s1 + $0xa0] sm:$0xff]   ;;  %v2080_v23 = vld [vmem:[%s2844_s1 + $0xa8] sm:$0xff]  }
   0x9   :  { %1894 = vmatpush3.bf16.msra.mxu1 %v2064_v7  ;;  %v2081_v24 = vld [vmem:[%s2844_s1 + $0x70] sm:$0xff]   ;;  %v2085_v28 = vld [vmem:[%s2844_s1 + $0x78] sm:$0xff]   ;;  %v2090_v32 = vld [vmem:[%s2843_s0 + $0x4] ss:$28 sps:$4 sm:$0xff]  }
   0xa   :  { %1895 = vmatprep.subr.bf16.mxu1 %v2067_v10  ;;  %v2082_v25 = vld [vmem:[%s2844_s1 + $0x30] sm:$0xff]   ;;  %v2086_v29 = vld [vmem:[%s2844_s1 + $0x38] sm:$0xff]   ;;  %530 = vmatprep.mubr.bf16.mxu0 %v2090_v32  ;;  %v2092_v34 = vld [vmem:[%s2844_s1 + $0x140] sm:$0xff]  }
   0xb   :  { %1874 = vmatpush3.bf16.msra.mxu0 %v2066_v9  ;;  %v2083_v26 = vld [vmem:[%s2844_s1 + $0xf0] sm:$0xff]   ;;  %v2087_v30 = vld [vmem:[%s2844_s1 + $0xf8] sm:$0xff]   ;;  %v2093_v35 = vld [vmem:[%s2843_s0 + $0x8] ss:$28 sps:$4 sm:$0xff]  }
   0xc   :  { %1875 = vmatprep.subr.bf16.mxu0 %v2069_v12  ;;  %v2084_v27 = vld [vmem:[%s2844_s1 + $0xb0] sm:$0xff]   ;;  %v2088_v31 = vld [vmem:[%s2843_s0] ss:$28 sps:$4 sm:$0xff]   ;;  %v2095_v36 = vld [vmem:[%s2843_s0 + $0xc] ss:$28 sps:$4 sm:$0xff]  }
   0xd   :  { %1896 = vmatpush3.bf16.msra.mxu1 %v2068_v11  ;;  %v2091_v33 = vld [vmem:[%s2844_s1 + $0xb8] sm:$0xff]   ;;  %v2096_v37 = vld [vmem:[%s2844_s1 + $0x100] sm:$0xff]   ;;  %571 = vmatprep.mubr.bf16.mxu1 %v2095_v36  ;;  %v2097_v39 = vld [vmem:[%s2844_s1 + $0x148] sm:$0xff]  }
   0xe   :  { %1897 = vmatprep.subr.bf16.mxu1 %v2071_v14  ;;  %v2098_v40 = vld [vmem:[%s2844_s1 + $0x108] sm:$0xff]   ;;  %v2099_v41 = vld [vmem:[%s2844_s1 + $0x150] sm:$0xff]   ;;  %v2101_v43 = vld [vmem:[%s2844_s1 + $0x158] sm:$0xff]  }
   0xf   :  { %1876 = vmatpush3.bf16.msra.mxu0 %v2070_v13  ;;  %v2100_v42 = vld [vmem:[%s2844_s1 + $0x110] sm:$0xff]   ;;  %v2102_v44 = vld [vmem:[%s2844_s1 + $0x118] sm:$0xff]   ;;  %v2103_v45 = vld [vmem:[%s2844_s1 + $0x160] sm:$0xff]  }
  0x10   :  { %1877 = vmatprep.subr.bf16.mxu0 %v2073_v16  ;;  %v2104_v46 = vld [vmem:[%s2844_s1 + $0x120] sm:$0xff]   ;;  %v2105_v47 = vld [vmem:[%s2844_s1 + $0x168] sm:$0xff]   ;;  %v2114_v50 = vld [vmem:[%s2843_s0 + $0x14] ss:$28 sps:$4 sm:$0xff]  }
  0x11   :  { %1898 = vmatpush3.bf16.msra.mxu1 %v2072_v15  ;;  %v2111_v48 = vld [vmem:[%s2844_s1 + $0x180] sm:$0xff]   ;;  %v2106_v49 = vld [vmem:[%s2844_s1 + $0x128] sm:$0xff]   ;;  %v2107_v51 = vld [vmem:[%s2844_s1 + $0x170] sm:$0xff]  }
  0x12   :  { %1899 = vmatprep.subr.bf16.mxu1 %v2075_v18  ;;  %v2115_v52 = vld [vmem:[%s2843_s0 + $0x18] ss:$28 sps:$4 sm:$0xff]   ;;  %v2112_v56 = vld [vmem:[%s2843_s0 + $0x10] ss:$28 sps:$4 sm:$0xff]  }
  0x13   :  { %1878 = vmatpush3.bf16.msra.mxu0 %v2074_v17  ;;  %v2108_v53 = vld [vmem:[%s2844_s1 + $0x130] sm:$0xff]   ;;  %v2109_v54 = vld [vmem:[%s2844_s1 + $0x178] sm:$0xff]  }
  0x14   :  { %1879 = vmatprep.subr.bf16.mxu0 %v2077_v20  ;;  %v2110_v55 = vld [vmem:[%s2844_s1 + $0x138] sm:$0xff]  }
  0x15   :  { %1900 = vmatpush3.bf16.msra.mxu1 %v2076_v19 }
  0x16   :  { %1901 = vmatprep.subr.bf16.mxu1 %v2079_v22 }
  0x17   :  { %1880 = vmatpush3.bf16.msra.mxu0 %v2078_v21 }
  0x18   :  { %1881 = vmatprep.subr.bf16.mxu0 %v2081_v24 }
  0x19   :  { %1902 = vmatpush3.bf16.msra.mxu1 %v2080_v23 }
  0x1a   :  { %1903 = vmatprep.subr.bf16.mxu1 %v2083_v26 }
  0x1b   :  { %1882 = vmatpush3.bf16.msra.mxu0 %v2082_v25 }
  0x1c   :  { %1883 = vmatprep.subr.bf16.mxu0 %v2085_v28 }
  0x1d   :  { %1904 = vmatpush3.bf16.msra.mxu1 %v2084_v27 }
  0x1e   :  { %1905 = vmatprep.subr.bf16.mxu1 %v2087_v30 }
  0x1f   :  { %1884 = vmatpush3.bf16.msra.mxu0 %v2086_v29 }
  0x20   :  { %1913 = vmatprep.subr.bf16.mxu0 %v2092_v34 }
  0x21   :  { %1906 = vmatpush3.bf16.msra.mxu1 %v2091_v33 }
  0x22   :  { %531 = vmatmul.mubr.bf16.vlgmr.msra.gmra.mrb[0].mxu0 %v2088_v31  ;;  %1969 = vmatprep.subr.bf16.mxu1 %v2266_v38 }
  0x23   :  { %1914 = vmatpush3.bf16.msra.mxu0 %v2096_v37  ;;  %612 = vmatprep.mubr.bf16.mxu0 %v2114_v50 }
  0x24   :  { %572 = vmatmul.mubr.bf16.vlgmr.msra.gmra.mrb[0].mxu1 %v2093_v35  ;;  %1915 = vmatprep.subr.bf16.mxu0 %v2097_v39 }
  0x25   :  { %1971 = vmatprep.mubr.msk.bf16.mxu1 %vm2267_vm0, %v2266_v38  ;;  %1970 = vmatpush3.bf16.msra.mxu1 %v2111_v48 }
  0x26   :  { %1975 = vmatprep.subr.bf16.mxu1 %v2266_v38 }
  0x27   :  { %1916 = vmatpush3.bf16.msra.mxu0 %v2098_v40 }
  0x28   :  { %1917 = vmatprep.subr.bf16.mxu0 %v2099_v41 }
  0x2b   :  { %1918 = vmatpush3.bf16.msra.mxu0 %v2100_v42 }
  0x2c   :  { %1919 = vmatprep.subr.bf16.mxu0 %v2101_v43  ;;  %1972 = vmatmul.mubr.msk.bf16.vlgmr.msra.gmra.mrb[4].mxu1 %vm494_vm1, %v2115_v52 }
  0x2d   :  { %1991 = vmatprep.mubr.msk.bf16.mxu1 %vm2267_vm0, %v2266_v38 }
  0x2f   :  { %1920 = vmatpush3.bf16.msra.mxu0 %v2102_v44 }
  0x30   :  { %1921 = vmatprep.subr.bf16.mxu0 %v2103_v45 }
  0x33   :  { %1922 = vmatpush3.bf16.msra.mxu0 %v2104_v46 }
  0x34   :  { %1923 = vmatprep.subr.bf16.mxu0 %v2105_v47 }
  0x37   :  { %1924 = vmatpush3.bf16.msra.mxu0 %v2106_v49 }
  0x38   :  { %1925 = vmatprep.subr.bf16.mxu0 %v2107_v51 }
  0x3b   :  { %1926 = vmatpush3.bf16.msra.mxu0 %v2108_v53 }
  0x3c   :  { %1927 = vmatprep.subr.bf16.mxu0 %v2109_v54 }
  0x3f   :  { %1928 = vmatpush3.bf16.msra.mxu0 %v2110_v55 }
  0x40   :  { %1995 = vmatprep.subr.bf16.mxu0 %v2266_v38 }
  0x42   :  { %613 = vmatmul.mubr.bf16.vlgmr.msra.gmra.mrb[4].mxu0 %v2112_v56 }
  0x43   :  { %2003 = vmatprep.mubr.msk.bf16.mxu0 %vm2267_vm0, %v2266_v38 }
  0x44   :  { %20 = vsyncpa [#allocation3], 0  ;;  %v2116_v57 = vld [vmem:[%s2846_s3] sm:$0xff]   ;;  %v2117_v58 = vld [vmem:[%s2846_s3 + $0x8] sm:$0xff]   ;;  %vm819_vm2 = vcmask 523264   ;;  %vm885_vm3 = vcmask 1045504  }
  0x45   :  { %1976 = vmatpush3.bf16.msra.mxu1 %v2116_v57  ;;  %v2118_v59 = vld [vmem:[%s2846_s3 + $0x10] sm:$0xff]   ;;  %v2119_v60 = vld [vmem:[%s2846_s3 + $0x18] sm:$0xff]   ;;  %v2120_v61 = vld [vmem:[%s2846_s3 + $0x20] sm:$0xff]   ;;  %vm881_vm4 = vcmask 97280  }
  0x46   :  { %1977 = vmatprep.subr.bf16.mxu1 %v2266_v38  ;;  %v2121_v62 = vld [vmem:[%s2846_s3 + $0x28] sm:$0xff]   ;;  %v2122_v63 = vld [vmem:[%s2846_s3 + $0x30] sm:$0xff]   ;;  %v2123_v0 = vld [vmem:[%s2846_s3 + $0x38] sm:$0xff]  }
  0x47   :  { %v2124_v1 = vld [vmem:[%s2848_s5] sm:$0xff]   ;;  %v2125_v2 = vld [vmem:[%s2848_s5 + $0x8] sm:$0xff]   ;;  %v2126_v37 = vld [vmem:[%s2848_s5 + $0x10] sm:$0xff]  }
  0x48   :  { %1996 = vmatpush3.bf16.msra.mxu0 %v2124_v1  ;;  %v1728_v4 = vld [vmem:[%s2845_s2] ss:$0 sm:$0xff]  ;;  %v2127_v39 = vld [vmem:[%s2848_s5 + $0x18] sm:$0xff]   ;;  %v2131_v1 = vld [vmem:[%s2854_s11 + $0x8] sm:$0xff]  }
  0x49   :  { %1978 = vmatpush3.bf16.msra.mxu1 %v2117_v58  ;;  %1997 = vmatprep.subr.bf16.mxu0 %v2266_v38  ;;  %v1786_v40 = vld [vmem:[%s2847_s4] ss:$0 sm:$0xff] }
  0x4a   :  { %1979 = vmatprep.subr.bf16.mxu1 %v2266_v38  ;;  %v2128_v50 = vld [vmem:[%s2850_s7] sm:$0x3f]  }
  0x4b   :  { %v887_v51 = vsel %vm885_vm3, %v2128_v50, 0  ;;  %v1795_v52 = vld [vmem:[%s2849_s6] ss:$0 sm:$0xff]  ;;  %v2175_v50 = vld [vmem:[%s2856_s13 + $0x15c] ss:$28 sps:$4 sm:$0xff]  }
  0x4c   :  { %1998 = vmatpush3.bf16.msra.mxu0 %v2125_v2  ;;  %v1801_v2 = vld [vmem:[%s2851_s8] ss:$0 sm:$0xff] }
  0x4d   :  { %1980 = vmatpush3.bf16.msra.mxu1 %v2118_v59  ;;  %1999 = vmatprep.subr.bf16.mxu0 %v2266_v38 }
  0x4e   :  { %1981 = vmatprep.subr.bf16.mxu1 %v2266_v38 }
  0x50   :  { %2000 = vmatpush3.bf16.msra.mxu0 %v2126_v37 }
  0x51   :  { %1982 = vmatpush3.bf16.msra.mxu1 %v2119_v60  ;;  %2001 = vmatprep.subr.bf16.mxu0 %v2266_v38 }
  0x52   :  { %1983 = vmatprep.subr.bf16.mxu1 %v2266_v38 }
  0x54   :  { %2002 = vmatpush3.bf16.msra.mxu0 %v2127_v39  ;;  %v2145_v39 = vld [vmem:[%s2856_s13 + $0x44] ss:$28 sps:$4 sm:$0xff]  }
  0x55   :  { %1984 = vmatpush3.bf16.msra.mxu1 %v2120_v61  ;;  %2013 = vmatprep.subr.bf16.mxu0 %v2266_v38 }
  0x56   :  { %1985 = vmatprep.subr.bf16.mxu1 %v2266_v38 }
  0x59   :  { %1986 = vmatpush3.bf16.msra.mxu1 %v2121_v62  ;;  %v2129_v62 = vld [vmem:[%s2852_s9] sm:$0x3f]  }
  0x5a   :  { %1987 = vmatprep.subr.bf16.mxu1 %v2266_v38 }
  0x5d   :  { %1988 = vmatpush3.bf16.msra.mxu1 %v2122_v63  ;;  %v951_v63 = vsel %vm885_vm3, %v2129_v62, 0 }
  0x5e   :  { %1989 = vmatprep.subr.bf16.mxu1 %v2266_v38 }
  0x61   :  { %1990 = vmatpush3.bf16.msra.mxu1 %v2123_v0  ;;  %v2130_v0 = vld [vmem:[%s2854_s11] sm:$0xff]  }
  0x62   :  { %2007 = vmatprep.subr.bf16.mxu1 %v2266_v38 }
  0xf5   :  { %v1885_v3 = vpop.f32.mrb[0].mxu0 }
  0xf6   :  { %v1886_v5 = vpop.f32.mrb[1].mxu0 }
  0xf7   :  { %v1887_v6 = vadd.f32 %v1886_v5, %v1885_v3  ;;  %v1888_v7 = vpop.f32.mrb[2].mxu0  ;;  %v1907_v8 = vpop.f32.mrb[0].mxu1 }
  0xf8   :  { %v1889_v9 = vpop.f32.mrb[3].mxu0  ;;  %v1908_v12 = vpop.f32.mrb[1].mxu1 }
  0xf9   :  { %v533_v10 = vadd.f32 %v1887_v6, %v1728_v4  ;;  %v1890_v11 = vadd.f32 %v1889_v9, %v1888_v7  ;;  %v1909_v13 = vadd.f32 %v1908_v12, %v1907_v8  ;;  %v1910_v14 = vpop.f32.mrb[2].mxu1  ;;  %v2132_v12 = vld [vmem:[%s2854_s11 + $0x10] sm:$0xff]  }
  0xfa   :  { %v1911_v16 = vpop.f32.mrb[3].mxu1 }
  0xfb   :  { %v536_v15 = vadd.f32 %v1890_v11, %v1728_v4  ;;  %v574_v17 = vadd.f32 %v1909_v13, %v533_v10  ;;  %v1912_v18 = vadd.f32 %v1911_v16, %v1910_v14  ;;  %v2133_v13 = vld [vmem:[%s2854_s11 + $0x18] sm:$0xff]   ;;  %v2139_v16 = vld [vmem:[%s2856_s13 + $0xc] ss:$28 sps:$4 sm:$0xff]  }
  0xfc   :  { %v2134_v14 = vld [vmem:[%s2856_s13] ss:$28 sps:$4 sm:$0xff]  }
  0xfd   :  { %v577_v19 = vadd.f32 %v1912_v18, %v536_v15  ;;  %v2136_v15 = vld [vmem:[%s2856_s13 + $0x4] ss:$28 sps:$4 sm:$0xff]   ;;  %v2140_v18 = vld [vmem:[%s2856_s13 + $0x38] ss:$28 sps:$4 sm:$0xff]  }
  0xff   :  { %v655_v20 = vpop.f32.mrb[4].mxu1 }
 0x100   :  { %v1973_v21 = vpop.f32.mrb[5].mxu1 }
 0x101   :  { %v658_v22 = vpop.f32.mrb[6].mxu1  ;;  %v2154_v21 = vld [vmem:[%s2856_s13 + $0xac] ss:$28 sps:$4 sm:$0xff]  }
 0x102   :  { %v1974_v23 = vpop.f32.mrb[7].mxu1 }
 0x103   :  { %v2160_v23 = vld [vmem:[%s2856_s13 + $0xe4] ss:$28 sps:$4 sm:$0xff]  }
 0x115   :  { %v1929_v24 = vpop.f32.mrb[4].mxu0 }
 0x116   :  { %v1930_v25 = vpop.f32.mrb[5].mxu0 }
 0x117   :  { %v1931_v26 = vadd.f32 %v1930_v25, %v1929_v24  ;;  %v1932_v27 = vpop.f32.mrb[6].mxu0  ;;  %v2158_v24 = vld [vmem:[%s2856_s13 + $0xe0] ss:$28 sps:$4 sm:$0xff]  }
 0x118   :  { %v1933_v28 = vpop.f32.mrb[7].mxu0  ;;  %v2166_v25 = vld [vmem:[%s2856_s13 + $0x11c] ss:$28 sps:$4 sm:$0xff]  }
 0x119   :  { %v615_v29 = vadd.f32 %v1931_v26, %v574_v17  ;;  %v1934_v30 = vadd.f32 %v1933_v28, %v1932_v27  ;;  %v2142_v17 = vld [vmem:[%s2856_s13 + $0x3c] ss:$28 sps:$4 sm:$0xff]   ;;  %v1804_v27 = vld [vmem:[%s2853_s10] ss:$0 sm:$0xff] }
 0x11a   :  { %v2164_v26 = vld [vmem:[%s2856_s13 + $0x118] ss:$28 sps:$4 sm:$0xff]  }
 0x11b   :  { %v656_v31 = vadd.f32 %v655_v20, %v615_v29  ;;  %v618_v32 = vadd.f32 %v1934_v30, %v577_v19  ;;  %v2148_v19 = vld [vmem:[%s2856_s13 + $0x74] ss:$28 sps:$4 sm:$0xff]  }
 0x11c   :  { %v2146_v20 = vld [vmem:[%s2856_s13 + $0x70] ss:$28 sps:$4 sm:$0xff]  }
 0x11d   :  { %v659_v33 = vadd.f32 %v658_v22, %v618_v32  ;;  %v662_v34 = vmax.f32 %v656_v31, 0.0  ;;  %v2152_v22 = vld [vmem:[%s2856_s13 + $0xa8] ss:$28 sps:$4 sm:$0xff]  }
 0x11f   :  { %v663_v35 = vmax.f32 %v659_v33, 0.0 }
 0x121   :  { %v664_v36 = vpack.c.bf16 %v663_v35, %v662_v34 }
 0x123   :  { %1992 = vmatmul.mubr.bf16.vlgmr.msra.gmra.mrb[8].mxu1 %v664_v36  ;;  %v2137_v36 = vld [vmem:[%s2856_s13 + $0x8] ss:$28 sps:$4 sm:$0xff]  }
 0x124   :  { %2009 = vmatprep.mubr.msk.bf16.mxu1 %vm2267_vm0, %v2266_v38  ;;  %2008 = vmatpush3.bf16.msra.mxu1 %v887_v51  ;;  %v2170_v51 = vld [vmem:[%s2856_s13 + $0x150] ss:$28 sps:$4 sm:$0xff]  }
 0x125   :  { %2019 = vmatprep.subr.bf16.mxu1 %v2266_v38 }
 0x1f6   :  { %v770_v41 = vpop.f32.mrb[8].mxu1 }
 0x1f7   :  { %v771_v42 = vadd.f32 %v1786_v40, %v770_v41  ;;  %v1993_v43 = vpop.f32.mrb[9].mxu1  ;;  %v2151_v41 = vld [vmem:[%s2856_s13 + $0x7c] ss:$28 sps:$4 sm:$0xff]  }
 0x1f8   :  { %v773_v44 = vpop.f32.mrb[10].mxu1  ;;  %v2157_v43 = vld [vmem:[%s2856_s13 + $0xb4] ss:$28 sps:$4 sm:$0xff]  }
 0x1f9   :  { %v774_v45 = vadd.f32 %v1786_v40, %v773_v44  ;;  %v1994_v46 = vpop.f32.mrb[11].mxu1  ;;  %v777_v47 = vmax.f32 %v771_v42, 0.0  ;;  %v2143_v40 = vld [vmem:[%s2856_s13 + $0x40] ss:$28 sps:$4 sm:$0xff]   ;;  %v2149_v42 = vld [vmem:[%s2856_s13 + $0x78] ss:$28 sps:$4 sm:$0xff]  }
 0x1fa   :  { %v2155_v44 = vld [vmem:[%s2856_s13 + $0xb0] ss:$28 sps:$4 sm:$0xff]   ;;  %v2161_v46 = vld [vmem:[%s2856_s13 + $0xe8] ss:$28 sps:$4 sm:$0xff]  }
 0x1fb   :  { %v778_v48 = vmax.f32 %v774_v45, 0.0  ;;  %v2163_v45 = vld [vmem:[%s2856_s13 + $0xec] ss:$28 sps:$4 sm:$0xff]  }
 0x1fd   :  { %v779_v49 = vpack.c.bf16 %v778_v48, %v777_v47  ;;  %v2169_v47 = vld [vmem:[%s2856_s13 + $0x124] ss:$28 sps:$4 sm:$0xff]  }
 0x1fe   :  { %v2167_v48 = vld [vmem:[%s2856_s13 + $0x120] ss:$28 sps:$4 sm:$0xff]  }
 0x1ff   :  { %2004 = vmatmul.mubr.msk.bf16.vlgmr.msra.gmra.mrb[8].mxu0 %vm819_vm2, %v779_v49  ;;  %v2172_v49 = vld [vmem:[%s2856_s13 + $0x154] ss:$28 sps:$4 sm:$0xff]  }
 0x200   :  { %2015 = vmatprep.mubr.msk.bf16.mxu0 %vm2267_vm0, %v2266_v38  ;;  %2014 = vmatpush3.bf16.msra.mxu0 %v951_v63 }
 0x201   :  { %1472 = vmatprep.subr.bf16.mxu0 %v2136_v15  ;;  %v2197_v15 = vld [vmem:[%s2856_s13 + $0xc0] ss:$28 sps:$4 sm:$0xff]  }
 0x2d2   :  { %v857_v53 = vpop.f32.mrb[8].mxu0 }
 0x2d3   :  { %v858_v54 = vadd.f32 %v1795_v52, %v857_v53  ;;  %v2005_v55 = vpop.f32.mrb[9].mxu0  ;;  %v2178_v53 = vld [vmem:[%s2856_s13 + $0x18c] ss:$28 sps:$4 sm:$0xff]  }
 0x2d4   :  { %v860_v56 = vpop.f32.mrb[10].mxu0  ;;  %v2176_v55 = vld [vmem:[%s2856_s13 + $0x188] ss:$28 sps:$4 sm:$0xff]  }
 0x2d5   :  { %v861_v57 = vadd.f32 %v1795_v52, %v860_v56  ;;  %v2006_v58 = vpop.f32.mrb[11].mxu0  ;;  %v864_v59 = vmax.f32 %v858_v54, 0.0  ;;  %v2173_v52 = vld [vmem:[%s2856_s13 + $0x158] ss:$28 sps:$4 sm:$0xff]   ;;  %v2179_v56 = vld [vmem:[%s2856_s13 + $0x190] ss:$28 sps:$4 sm:$0xff]  }
 0x2d6   :  { %v2181_v54 = vld [vmem:[%s2856_s13 + $0x194] ss:$28 sps:$4 sm:$0xff]   ;;  %v2268_v58 = vmov 0  }
 0x2d7   :  { %v865_v60 = vmax.f32 %v861_v57, 0.0  ;;  %v2184_v57 = vld [vmem:[%s2856_s13 + $0x14] ss:$28 sps:$4 sm:$0xff]  }
 0x2d9   :  { %v866_v61 = vpack.c.bf16 %v865_v60, %v864_v59  ;;  %v1807_v59 = vld [vmem:[%s2855_s12] ss:$0 sm:$0xff] }
 0x2db   :  { %2010 = vmatmul.mubr.msk.bf16.vlgmr.msra.gmra.mrb[12].mxu1 %vm881_vm4, %v866_v61 }
 0x2dc   :  { %2027 = vmatprep.mubr.msk.bf16.mxu1 %vm2267_vm0, %v2266_v38  ;;  %2020 = vmatpush3.bf16.msra.mxu1 %v2130_v0 }
 0x2dd   :  { %2021 = vmatprep.subr.bf16.mxu1 %v2266_v38 }
 0x2e0   :  { %2022 = vmatpush3.bf16.msra.mxu1 %v2131_v1 }
 0x2e1   :  { %2023 = vmatprep.subr.bf16.mxu1 %v2266_v38 }
 0x2e4   :  { %2024 = vmatpush3.bf16.msra.mxu1 %v2132_v12  ;;  %v2193_v12 = vld [vmem:[%s2856_s13 + $0x88] ss:$28 sps:$4 sm:$0xff]  }
 0x2e5   :  { %2025 = vmatprep.subr.bf16.mxu1 %v2266_v38 }
 0x2e8   :  { %2026 = vmatpush3.bf16.msra.mxu1 %v2133_v13  ;;  %v2196_v13 = vld [vmem:[%s2856_s13 + $0xbc] ss:$28 sps:$4 sm:$0xff]  }
 0x2e9   :  { %1515 = vmatprep.subr.bf16.mxu1 %v2139_v16  ;;  %v2200_v16 = vld [vmem:[%s2856_s13 + $0xf4] ss:$28 sps:$4 sm:$0xff]  }
 0x3ae   :  { %v923_v3 = vpop.f32.mrb[12].mxu1 }
 0x3af   :  { %v924_v4 = vadd.f32 %v1801_v2, %v923_v3  ;;  %v2011_v5 = vpop.f32.mrb[13].mxu1 }
 0x3b0   :  { %v926_v6 = vpop.f32.mrb[14].mxu1  ;;  %v2185_v5 = vld [vmem:[%s2856_s13 + $0x18] ss:$28 sps:$4 sm:$0xff]  }
 0x3b1   :  { %v927_v7 = vadd.f32 %v1801_v2, %v926_v6  ;;  %v2012_v8 = vpop.f32.mrb[15].mxu1  ;;  %v930_v9 = vmax.f32 %v924_v4, 0.0  ;;  %v2182_v4 = vld [vmem:[%s2856_s13 + $0x10] ss:$28 sps:$4 sm:$0xff]  }
 0x3b2   :  { %v2186_v8 = vld [vmem:[%s2856_s13 + $0x48] ss:$28 sps:$4 sm:$0xff]  }
 0x3b3   :  { %v931_v10 = vmax.f32 %v927_v7, 0.0  ;;  %v2188_v7 = vld [vmem:[%s2856_s13 + $0x4c] ss:$28 sps:$4 sm:$0xff]  }
 0x3b5   :  { %v932_v11 = vpack.c.bf16 %v931_v10, %v930_v9  ;;  %v2189_v9 = vld [vmem:[%s2856_s13 + $0x50] ss:$28 sps:$4 sm:$0xff]   ;;  %v2192_v10 = vld [vmem:[%s2856_s13 + $0x84] ss:$28 sps:$4 sm:$0xff]  }
 0x3b7   :  { %2016 = vmatmul.mubr.msk.bf16.vlgmr.msra.gmra.mrb[12].mxu0 %vm881_vm4, %v932_v11  ;;  %v2190_v11 = vld [vmem:[%s2856_s13 + $0x80] ss:$28 sps:$4 sm:$0xff]  }
 0x3b8   :  { %1473 = vmatpush1.bf16.msra.mxu0 %v2134_v14  ;;  %1504 = vmatprep.mubr.bf16.mxu0 %v2268_v58  ;;  %v2194_v14 = vld [vmem:[%s2856_s13 + $0xb8] ss:$28 sps:$4 sm:$0xff]  }
 0x3b9   :  { %1474 = vmatprep.subr.bf16.mxu0 %v2142_v17  ;;  %v2198_v17 = vld [vmem:[%s2856_s13 + $0xf0] ss:$28 sps:$4 sm:$0xff]  }
 0x3bc   :  { %1475 = vmatpush1.bf16.msra.mxu0 %v2140_v18  ;;  %v2201_v18 = vld [vmem:[%s2856_s13 + $0xf8] ss:$28 sps:$4 sm:$0xff]  }
 0x3bd   :  { %1476 = vmatprep.subr.bf16.mxu0 %v2148_v19  ;;  %v2204_v19 = vld [vmem:[%s2856_s13 + $0x12c] ss:$28 sps:$4 sm:$0xff]  }
 0x3c0   :  { %1477 = vmatpush1.bf16.msra.mxu0 %v2146_v20  ;;  %v2202_v20 = vld [vmem:[%s2856_s13 + $0x128] ss:$28 sps:$4 sm:$0xff]  }
 0x3c1   :  { %1478 = vmatprep.subr.bf16.mxu0 %v2154_v21  ;;  %v2205_v21 = vld [vmem:[%s2856_s13 + $0x130] ss:$28 sps:$4 sm:$0xff]  }
 0x3c4   :  { %1479 = vmatpush1.bf16.msra.mxu0 %v2152_v22  ;;  %v2208_v22 = vld [vmem:[%s2856_s13 + $0x164] ss:$28 sps:$4 sm:$0xff]  }
 0x3c5   :  { %1480 = vmatprep.subr.bf16.mxu0 %v2160_v23  ;;  %v2206_v23 = vld [vmem:[%s2856_s13 + $0x160] ss:$28 sps:$4 sm:$0xff]  }
 0x3c8   :  { %1481 = vmatpush1.bf16.msra.mxu0 %v2158_v24  ;;  %v2209_v24 = vld [vmem:[%s2856_s13 + $0x168] ss:$28 sps:$4 sm:$0xff]  }
 0x3c9   :  { %1482 = vmatprep.subr.bf16.mxu0 %v2166_v25  ;;  %v2212_v25 = vld [vmem:[%s2856_s13 + $0x19c] ss:$28 sps:$4 sm:$0xff]  }
 0x3cc   :  { %1483 = vmatpush1.bf16.msra.mxu0 %v2164_v26  ;;  %v2210_v26 = vld [vmem:[%s2856_s13 + $0x198] ss:$28 sps:$4 sm:$0xff]  }
 0x3cd   :  { %1484 = vmatprep.subr.bf16.mxu0 %v2172_v49 }
 0x3d0   :  { %1485 = vmatpush1.bf16.msra.mxu0 %v2170_v51 }
 0x3d1   :  { %1486 = vmatprep.subr.bf16.mxu0 %v2178_v53 }
 0x3d4   :  { %1487 = vmatpush1.bf16.msra.mxu0 %v2176_v55 }
 0x3d5   :  { %1558 = vmatprep.subr.bf16.mxu0 %v2184_v57 }
 0x48a   :  { %v987_v28 = vpop.f32.mrb[12].mxu0 }
 0x48b   :  { %v988_v29 = vadd.f32 %v1804_v27, %v987_v28  ;;  %v2017_v30 = vpop.f32.mrb[13].mxu0  ;;  %v1149_v28 = vlaneseq }
 0x48c   :  { %v990_v31 = vpop.f32.mrb[14].mxu0 }
 0x48d   :  { %v991_v32 = vadd.f32 %v1804_v27, %v990_v31  ;;  %v2018_v33 = vpop.f32.mrb[15].mxu0  ;;  %v994_v34 = vmax.f32 %v988_v29, 0.0  ;;  %v2213_v27 = vld [vmem:[%s2856_s13 + $0x1a0] ss:$28 sps:$4 sm:$0xff]   ;;  %v2808_v29 = vshrl.u32 %v1149_v28, 7  ;;  %s2269_s13 = smov [#allocation2]  }
 0x48f   :  { %v995_v35 = vmax.f32 %v991_v32, 0.0  ;;  %v1151_v30 = vsub.s32 0, %v2808_v29  ;;  %v1159_v31 = vsub.s32 2, %v2808_v29  ;;  %v2815_v32 = vld [vmem:[%s2857_s14] sm:$0x7f]  ;;  %v1155_v33 = vsub.s32 1, %v2808_v29 }
 0x490   :  { %s1717_s14 = sshll.u32 %s2269_s13, 4  ;;  %s1718_s14 = int_to_ptr.vmem [resolvable:$true] %s1717_s14 }
 0x491   :  { %v996_v37 = vpack.c.bf16 %v995_v35, %v994_v34  ;;  %v1152_v34 = vrot.slane %v2815_v32, %v1151_v30  ;;  %v1160_v35 = vrot.slane %v2815_v32, %v1159_v31  ;;  %s2242_s11 = scalar_lea.vmem %s1718_s14, 1792  ;;  %p2247_p1 = scmp.lt.s32.totalorder %s1718_s14, %s1718_s14 }
 0x492   :  { %p2243_p0 = scmp.ne.s32.totalorder %s1718_s14, %s2242_s11  ;;  %p2248_p2 = scmp.lt.s32.totalorder %s2242_s11, %s2242_s11 }
 0x493   :  { %2028 = vmatmul.mubr.msk.bf16.vlgmr.msra.gmra.mrb[16].mxu1 %vm819_vm2, %v996_v37 }
 0x494   :  { %1516 = vmatpush1.bf16.msra.mxu1 %v2137_v36  ;;  %1547 = vmatprep.mubr.bf16.mxu1 %v2268_v58  ;;  %v1156_v36 = vrot.slane %v2815_v32, %v1155_v33  ;;  %p2249_p3 = por %p2248_p2, %p2247_p1 }
 0x495   :  { %1517 = vmatprep.subr.bf16.mxu1 %v2145_v39 }
 0x496   :  { %p2250_p4 = pnand %p2249_p3, %p2243_p0 }
 0x498   :  { %1518 = vmatpush1.bf16.msra.mxu1 %v2143_v40 }
 0x499   :  { %1519 = vmatprep.subr.bf16.mxu1 %v2151_v41 }
 0x49c   :  { %1520 = vmatpush1.bf16.msra.mxu1 %v2149_v42 }
 0x49d   :  { %1521 = vmatprep.subr.bf16.mxu1 %v2157_v43 }
 0x4a0   :  { %1522 = vmatpush1.bf16.msra.mxu1 %v2155_v44 }
 0x4a1   :  { %1523 = vmatprep.subr.bf16.mxu1 %v2163_v45 }
 0x4a4   :  { %1524 = vmatpush1.bf16.msra.mxu1 %v2161_v46 }
 0x4a5   :  { %1525 = vmatprep.subr.bf16.mxu1 %v2169_v47 }
 0x4a8   :  { %1526 = vmatpush1.bf16.msra.mxu1 %v2167_v48 }
 0x4a9   :  { %1527 = vmatprep.subr.bf16.mxu1 %v2175_v50 }
 0x4ac   :  { %1528 = vmatpush1.bf16.msra.mxu1 %v2173_v52 }
 0x4ad   :  { %1529 = vmatprep.subr.bf16.mxu1 %v2181_v54 }
 0x4b0   :  { %1530 = vmatpush1.bf16.msra.mxu1 %v2179_v56 }
 0x4b1   :  { %2031 = vmatprep.subr.bf16.mxu1 %v2266_v38 }
 0x566   :  { %v1073_v60 = vpop.f32.mrb[16].mxu1 }
 0x567   :  { %v1074_v61 = vadd.f32 %v1807_v59, %v1073_v60  ;;  %v2029_v62 = vpop.f32.mrb[17].mxu1 }
 0x568   :  { %v1076_v63 = vpop.f32.mrb[18].mxu1 }
 0x569   :  { %v1077_v0 = vadd.f32 %v1807_v59, %v1076_v63  ;;  %v2030_v1 = vpop.f32.mrb[19].mxu1  ;;  %v1080_v2 = vmax.f32 %v1074_v61, 0.0 }
 0x56b   :  { %v1081_v3 = vmax.f32 %v1077_v0, 0.0 }
 0x56d   :  { %v1082_v6 = vpack.c.bf16 %v1081_v3, %v1080_v2 }
 0x56f   :  { %1505 = vmatmul.mubr.bf16.vlgmr.msra.gmra.mrb[16].mxu0 %v1082_v6  ;;  %1548 = vmatmul.mubr.bf16.vlgmr.msra.gmra.mrb[20].mxu1 %v1082_v6 }
 0x570   :  { %1559 = vmatpush1.bf16.msra.mxu0 %v2182_v4  ;;  %2032 = vmatpush3.bf16.msra.mxu1 %v2185_v5 }
 0x571   :  { %1560 = vmatprep.subr.bf16.mxu0 %v2188_v7  ;;  %2033 = vmatprep.subr.bf16.mxu1 %v2266_v38 }
 0x572   :  { %1590 = vmatprep.mubr.bf16.mxu0 %v2268_v58  ;;  %2047 = vmatprep.mubr.msk.bf16.mxu1 %vm2267_vm0, %v2266_v38 }
 0x574   :  { %1561 = vmatpush1.bf16.msra.mxu0 %v2186_v8  ;;  %2034 = vmatpush3.bf16.msra.mxu1 %v2189_v9 }
 0x575   :  { %1562 = vmatprep.subr.bf16.mxu0 %v2192_v10  ;;  %2035 = vmatprep.subr.bf16.mxu1 %v2266_v38 }
 0x578   :  { %1563 = vmatpush1.bf16.msra.mxu0 %v2190_v11  ;;  %2036 = vmatpush3.bf16.msra.mxu1 %v2193_v12 }
 0x579   :  { %1564 = vmatprep.subr.bf16.mxu0 %v2196_v13  ;;  %2037 = vmatprep.subr.bf16.mxu1 %v2266_v38 }
 0x57c   :  { %1565 = vmatpush1.bf16.msra.mxu0 %v2194_v14  ;;  %2038 = vmatpush3.bf16.msra.mxu1 %v2197_v15 }
 0x57d   :  { %1566 = vmatprep.subr.bf16.mxu0 %v2200_v16  ;;  %2039 = vmatprep.subr.bf16.mxu1 %v2266_v38 }
 0x580   :  { %1567 = vmatpush1.bf16.msra.mxu0 %v2198_v17  ;;  %2040 = vmatpush3.bf16.msra.mxu1 %v2201_v18 }
 0x581   :  { %1568 = vmatprep.subr.bf16.mxu0 %v2204_v19  ;;  %2041 = vmatprep.subr.bf16.mxu1 %v2266_v38 }
 0x584   :  { %1569 = vmatpush1.bf16.msra.mxu0 %v2202_v20  ;;  %2042 = vmatpush3.bf16.msra.mxu1 %v2205_v21 }
 0x585   :  { %1570 = vmatprep.subr.bf16.mxu0 %v2208_v22  ;;  %2043 = vmatprep.subr.bf16.mxu1 %v2266_v38 }
 0x588   :  { %1571 = vmatpush1.bf16.msra.mxu0 %v2206_v23  ;;  %2044 = vmatpush3.bf16.msra.mxu1 %v2209_v24  ;;  %v1167_v23 = vsub.s32 4, %v2808_v29  ;;  %v1175_v24 = vsub.s32 6, %v2808_v29 }
 0x589   :  { %1572 = vmatprep.subr.bf16.mxu0 %v2212_v25  ;;  %2045 = vmatprep.subr.bf16.mxu1 %v2266_v38  ;;  %v1163_v38 = vsub.s32 3, %v2808_v29  ;;  %v1171_v25 = vsub.s32 5, %v2808_v29 }
 0x58b   :  { %v1164_v37 = vrot.slane %v2815_v32, %v1163_v38  ;;  %v1172_v28 = vrot.slane %v2815_v32, %v1171_v25 }
 0x58c   :  { %1573 = vmatpush1.bf16.msra.mxu0 %v2210_v26  ;;  %2046 = vmatpush3.bf16.msra.mxu1 %v2213_v27  ;;  %v1168_v26 = vrot.slane %v2815_v32, %v1167_v23  ;;  %v1176_v27 = vrot.slane %v2815_v32, %v1175_v24 }
 0x58f   :  { %1591 = vmatmul.mubr.bf16.vlgmr.msra.gmra.mrb[20].mxu0 %v1082_v6  ;;  %2048 = vmatmul.mubr.bf16.vlgmr.msra.gmra.mrb[24].mxu1 %v1082_v6 }
 0x642   :  { %v1506_v39 = vpop.f32.mrb[16].mxu0  ;;  %v1549_v40 = vpop.f32.mrb[20].mxu1 }
 0x643   :  { %v1507_v41 = vadd.f32 %v1506_v39, %v1152_v34  ;;  %v1550_v42 = vadd.f32 %v1549_v40, %v1160_v35  ;;  %v1508_v43 = vpop.f32.mrb[17].mxu0  ;;  %v1551_v44 = vpop.f32.mrb[21].mxu1 }
 0x644   :  { %v1509_v45 = vadd.f32 %v1508_v43, %v1156_v36  ;;  %v1552_v46 = vadd.f32 %v1551_v44, %v1164_v37  ;;  %v1510_v47 = vpop.f32.mrb[18].mxu0  ;;  %v1553_v48 = vpop.f32.mrb[22].mxu1 }
 0x645   :  { %v1642_v49 = vmul.f32 0.5, %v1507_v41  ;;  %v1644_v50 = vmul.f32 0.5, %v1550_v42  ;;  %v1511_v51 = vadd.f32 %v1510_v47, %v1152_v34  ;;  %v1554_v52 = vadd.f32 %v1553_v48, %v1160_v35  ;;  %v1512_v53 = vpop.f32.mrb[19].mxu0  ;;  %v1555_v54 = vpop.f32.mrb[23].mxu1 }
 0x646   :  { %v1643_v55 = vmul.f32 0.5, %v1509_v45  ;;  %v1645_v56 = vmul.f32 0.5, %v1552_v46  ;;  %v1513_v57 = vadd.f32 %v1512_v53, %v1156_v36  ;;  %v1556_v58 = vadd.f32 %v1555_v54, %v1164_v37 }
 0x647   :  { %2214 = vtanh.f32 %v1642_v49  ;;  %v1649_v59 = vmul.f32 0.5, %v1511_v51  ;;  %v1651_v60 = vmul.f32 0.5, %v1554_v52 }
 0x648   :  { %2216 = vtanh.f32 %v1644_v50  ;;  %v1650_v61 = vmul.f32 0.5, %v1513_v57  ;;  %v1652_v62 = vmul.f32 0.5, %v1556_v58 }
 0x649   :  { %2218 = vtanh.f32 %v1643_v55 }
 0x64a   :  { %2220 = vtanh.f32 %v1645_v56 }
 0x64b   :  { %2222 = vtanh.f32 %v1649_v59 }
 0x64c   :  { %2224 = vtanh.f32 %v1651_v60 }
 0x64d   :  { %2226 = vtanh.f32 %v1650_v61 }
 0x64e   :  { %2228 = vtanh.f32 %v1652_v62 }
 0x651   :  { %v2215_v63 = vpop.eup %2214 }
 0x652   :  { %v2217_v0 = vpop.eup %2216  ;;  %v1670_v1 = vmul.f32 0.5, %v2215_v63 }
 0x653   :  { %v2219_v2 = vpop.eup %2218  ;;  %v1672_v3 = vmul.f32 0.5, %v2217_v0 }
 0x654   :  { %v2221_v4 = vpop.eup %2220  ;;  %v1684_v5 = vadd.f32 0.5, %v1670_v1  ;;  %v1671_v6 = vmul.f32 0.5, %v2219_v2 }
 0x655   :  { %v2223_v7 = vpop.eup %2222  ;;  %v1686_v8 = vadd.f32 0.5, %v1672_v3  ;;  %v1673_v9 = vmul.f32 0.5, %v2221_v4 }
 0x656   :  { %v2225_v10 = vpop.eup %2224  ;;  %1698 = vst [vmem:[#allocation2] sm:$0xff] %v1684_v5  ;;  %v1685_v11 = vadd.f32 0.5, %v1671_v6  ;;  %v1677_v12 = vmul.f32 0.5, %v2223_v7 }
 0x657   :  { %v2227_v13 = vpop.eup %2226  ;;  %1700 = vst [vmem:[#allocation2 + $0x10] sm:$0xff] %v1686_v8  ;;  %v1687_v14 = vadd.f32 0.5, %v1673_v9  ;;  %v1679_v15 = vmul.f32 0.5, %v2225_v10 }
 0x658   :  { %v2229_v16 = vpop.eup %2228  ;;  %1699 = vst [vmem:[#allocation2 + $0x8] sm:$0xff] %v1685_v11  ;;  %v1691_v17 = vadd.f32 0.5, %v1677_v12  ;;  %v1678_v18 = vmul.f32 0.5, %v2227_v13 }
 0x659   :  { %1701 = vst [vmem:[#allocation2 + $0x18] sm:$0xff] %v1687_v14  ;;  %v1693_v19 = vadd.f32 0.5, %v1679_v15  ;;  %v1680_v20 = vmul.f32 0.5, %v2229_v16 }
 0x65a   :  { %1705 = vst [vmem:[#allocation2 + $0x38] sm:$0xff] %v1691_v17  ;;  %v1692_v21 = vadd.f32 0.5, %v1678_v18 }
 0x65b   :  { %1707 = vst [vmem:[#allocation2 + $0x48] sm:$0xff] %v1693_v19  ;;  %v1694_v22 = vadd.f32 0.5, %v1680_v20 }
 0x65c   :  { %1706 = vst [vmem:[#allocation2 + $0x40] sm:$0xff] %v1692_v21 }
 0x65d   :  { %1708 = vst [vmem:[#allocation2 + $0x50] sm:$0xff] %v1694_v22 }
 0x662   :  { %v1592_v30 = vpop.f32.mrb[20].mxu0  ;;  %v1635_v31 = vpop.f32.mrb[24].mxu1 }
 0x663   :  { %v1593_v33 = vadd.f32 %v1592_v30, %v1168_v26  ;;  %v1636_v38 = vadd.f32 %v1635_v31, %v1176_v27  ;;  %v1594_v34 = vpop.f32.mrb[21].mxu0  ;;  %v2049_v35 = vpop.f32.mrb[25].mxu1 }
 0x664   :  { %v1595_v36 = vadd.f32 %v1594_v34, %v1172_v28  ;;  %v1596_v37 = vpop.f32.mrb[22].mxu0  ;;  %v1638_v39 = vpop.f32.mrb[26].mxu1 }
 0x665   :  { %v1646_v40 = vmul.f32 0.5, %v1593_v33  ;;  %v1648_v41 = vmul.f32 0.5, %v1636_v38  ;;  %v1597_v42 = vadd.f32 %v1596_v37, %v1168_v26  ;;  %v1639_v29 = vadd.f32 %v1638_v39, %v1176_v27  ;;  %v1598_v43 = vpop.f32.mrb[23].mxu0  ;;  %v2050_v44 = vpop.f32.mrb[27].mxu1 }
 0x666   :  { %v1647_v45 = vmul.f32 0.5, %v1595_v36  ;;  %v1599_v46 = vadd.f32 %v1598_v43, %v1172_v28 }
 0x667   :  { %2230 = vtanh.f32 %v1646_v40  ;;  %v1653_v47 = vmul.f32 0.5, %v1597_v42  ;;  %v1655_v32 = vmul.f32 0.5, %v1639_v29 }
 0x668   :  { %2232 = vtanh.f32 %v1648_v41  ;;  %v1654_v48 = vmul.f32 0.5, %v1599_v46 }
 0x669   :  { %2234 = vtanh.f32 %v1647_v45 }
 0x66a   :  { %2236 = vtanh.f32 %v1653_v47 }
 0x66b   :  { %2238 = vtanh.f32 %v1655_v32 }
 0x66c   :  { %2240 = vtanh.f32 %v1654_v48 }
 0x671   :  { %v2231_v49 = vpop.eup %2230 }
 0x672   :  { %v2233_v50 = vpop.eup %2232  ;;  %v1674_v51 = vmul.f32 0.5, %v2231_v49 }
 0x673   :  { %v2235_v52 = vpop.eup %2234  ;;  %v1676_v53 = vmul.f32 0.5, %v2233_v50 }
 0x674   :  { %v2237_v54 = vpop.eup %2236  ;;  %v1688_v55 = vadd.f32 0.5, %v1674_v51  ;;  %v1675_v56 = vmul.f32 0.5, %v2235_v52 }
 0x675   :  { %v2239_v57 = vpop.eup %2238  ;;  %v1690_v58 = vadd.f32 0.5, %v1676_v53  ;;  %v1681_v59 = vmul.f32 0.5, %v2237_v54 }
 0x676   :  { %v2241_v60 = vpop.eup %2240  ;;  %1702 = vst [vmem:[#allocation2 + $0x20] sm:$0xff] %v1688_v55  ;;  %v1689_v61 = vadd.f32 0.5, %v1675_v56  ;;  %v1683_v62 = vmul.f32 0.5, %v2239_v57 }
 0x677   :  { %1704 = vst.msk [vmem:[#allocation2 + $0x30] sm:$0xff] %vm494_vm1, %v1690_v58  ;;  %v1695_v63 = vadd.f32 0.5, %v1681_v59  ;;  %v1682_v0 = vmul.f32 0.5, %v2241_v60 }
 0x678   :  { %1703 = vst [vmem:[#allocation2 + $0x28] sm:$0xff] %v1689_v61  ;;  %v1697_v1 = vadd.f32 0.5, %v1683_v62 }
 0x679   :  { %1709 = vst [vmem:[#allocation2 + $0x58] sm:$0xff] %v1695_v63  ;;  %v1696_v2 = vadd.f32 0.5, %v1682_v0 }
 0x67a   :  { %1711 = vst.msk [vmem:[#allocation2 + $0x68] sm:$0xff] %vm494_vm1, %v1697_v1 }
 0x67b   :  { %1710 = vst [vmem:[#allocation2 + $0x60] sm:$0xff] %v1696_v2 }
 0x67c   :  { %2253 = shalt.err (!%p2250_p4)
}
 0x67d   :  { %s2254_s17 = scalar_lea.hbm %s2858_s15, 1792 }
 0x67e   :  { %p2255_p5 = scmp.ne.s32.totalorder %s2858_s15, %s2254_s17  ;;  %p2258_p6 = scmp.lt.u32.totalorder %s2254_s17, %s2858_s15 }
 0x680   :  { %p2260_p7 = pnand %p2258_p6, %p2255_p5 }
 0x682   :  { %2263 = shalt.err (!%p2260_p7)
}
 0x683   :  { %s2270_s6 = smov 896   ;;  %s2271_s20 = smov 56  }
 0x684   :  { %1723 = dma.vmem_to_hbm [thread:$0]  %s1718_s14, 1792, %s2858_s15, [#allocation3], %s2270_s6, %s2270_s6, %s2271_s20  }
 0x685   :  { %2264 = dma.done.wait [#allocation3], 1792  }
 0x686   :  { %2265 = vsyncadd [#allocation3], 4294965504 }
 0x687   :  { %1727 = vsyncpa [#allocation3], 1 }

</bundles_post_ra>
